<compile_context>
chip_gen: v7x
topology: tpu7x:2x2x1
jax: 0.10.0
libtpu: 0.0.40
codegen_flags: <defaults>
</compile_context>

<pallas_src>
import numpy as np
import jax
import jax.numpy as jnp
from jax.experimental import pallas as pl
from jax.experimental.pallas import tpu as pltpu

# Keep the pure-JAX reference matmuls at full f32 precision so the tolerance
# check compares like-for-like with the in-kernel f32 MXU dots.
jax.config.update("jax_default_matmul_precision", "highest")

# ---- problem sizes (small, consistent with a latent-vector score net) ----
B = 8        # batch (rows per forward call)
D = 32       # latent dim (input == output dim of score net)
H = 64       # hidden dim
TEMB = 32    # sinusoidal time-embedding dim ([sin | cos])
HALF = TEMB // 2
_MAX_TILE_T = 16   # 16 steps * B=8 rows = 128 MXU rows per matmul pass

# Compile-time tables for the embedding (passed as kernel INPUTS, not captured):
#   emb[k]        = sin(t * f[k])                    for k <  HALF
#   emb[k + HALF] = cos(t * f[k]) = sin(t*f[k]+pi/2) for k >= HALF
_F = np.exp(-np.log(10000.0) * np.arange(HALF, dtype=np.float32) / HALF)
_FREQS = np.concatenate([_F, _F]).reshape(1, TEMB).astype(np.float32)
_PHASE = np.concatenate([np.zeros(HALF, np.float32),
                         np.full(HALF, np.pi / 2, np.float32)]).reshape(1, TEMB)


def _ode_wrapper_kernel(t_ref, x_ref, freqs_ref, phase_ref,
                        w1_ref, wt_ref, b1_ref, w2_ref, b2_ref, o_ref):
    tile_t, b, d = x_ref.shape
    h_dim = w1_ref.shape[1]

    # --- time embedding + time bias, vectorized over the step tile ---------
    t_blk = t_ref[...]                                            # (TILE_T, 1)
    emb = jnp.sin(t_blk * freqs_ref[...] + phase_ref[...])        # (TILE_T, TEMB)
    time_bias = jnp.dot(emb, wt_ref[...],
                        preferred_element_type=jnp.float32) + b1_ref[...]  # (TILE_T, H)

    # --- hidden layer: one batched (TILE_T*B, D) @ (D, H) MXU pass ---------
    x2d = x_ref[...].reshape(tile_t * b, d)                       # free reshape
    h2d = jnp.dot(x2d, w1_ref[...], preferred_element_type=jnp.float32)
    h = h2d.reshape(tile_t, b, h_dim) + time_bias[:, None, :]     # per-step bias
    h = h * jax.nn.sigmoid(h)                                     # SiLU

    # --- output projection: one batched (TILE_T*B, H) @ (H, D) pass --------
    out2d = jnp.dot(h.reshape(tile_t * b, h_dim), w2_ref[...],
                    preferred_element_type=jnp.float32) + b2_ref[...]
    o_ref[...] = out2d.reshape(tile_t, b, d).astype(o_ref.dtype)


@jax.jit
def ode_wrapper_forward_steps(t_steps, x_steps, params):
    """Fused evaluation of ODEWrapper.forward for T (t, x) pairs in one call.

    t_steps: [T] f32, x_steps: [T, B, D] f32 -> [T, B, D] f32.
    Step s computes score_net(x_steps[s], t_steps[s] * ones(B)).
    """
    w1, wt, b1, w2, b2 = params
    T, b, d = x_steps.shape
    h_dim = w1.shape[1]
    temb = wt.shape[0]

    tile_t = min(T, _MAX_TILE_T)
    n_tiles = pl.cdiv(T, tile_t)
    t_padded = n_tiles * tile_t

    t2d = t_steps.astype(jnp.float32).reshape(T, 1)
    x_pad = x_steps
    if t_padded != T:  # pad the step axis so the tile divides it exactly
        pad = t_padded - T
        t2d = jnp.pad(t2d, ((0, pad), (0, 0)))
        x_pad = jnp.pad(x_steps, ((0, pad), (0, 0), (0, 0)))

    freqs = jnp.asarray(_FREQS)
    phase = jnp.asarray(_PHASE)

    # advisory cost estimate for XLA's scheduler
    flops = (2 * t_padded * b * d * h_dim          # x @ W1
             + 2 * t_padded * b * h_dim * d        # h @ W2
             + 2 * t_padded * temb * h_dim         # emb @ Wt
             + 6 * t_padded * b * h_dim)           # bias adds + SiLU mul
    transcendentals = t_padded * temb + t_padded * b * h_dim
    bytes_accessed = 4 * (2 * t_padded * b * d + t_padded + 2 * temb
                          + d * h_dim + temb * h_dim + h_dim + h_dim * d + d)

    grid_spec = pltpu.PrefetchScalarGridSpec(
        num_scalar_prefetch=0,
        grid=(n_tiles,),
        in_specs=[
            # per-tile step times (TILE_T, 1)
            pl.BlockSpec((tile_t, 1), lambda i: (i, 0)),
            # per-tile x block
            pl.BlockSpec((tile_t, b, d), lambda i: (i, 0, 0)),
            # sinusoid tables: constant block index -> resident in VMEM
            pl.BlockSpec((1, temb), lambda i: (0, 0)),
            pl.BlockSpec((1, temb), lambda i: (0, 0)),
            # weights: constant block index -> DMA'd once, resident in VMEM
            pl.BlockSpec((d, h_dim), lambda i: (0, 0)),
            pl.BlockSpec((temb, h_dim), lambda i: (0, 0)),
            pl.BlockSpec((1, h_dim), lambda i: (0, 0)),
            pl.BlockSpec((h_dim, d), lambda i: (0, 0)),
            pl.BlockSpec((1, d), lambda i: (0, 0)),
        ],
        out_specs=pl.BlockSpec((tile_t, b, d), lambda i: (i, 0, 0)),
    )

    out = pl.pallas_call(
        _ode_wrapper_kernel,
        out_shape=jax.ShapeDtypeStruct((t_padded, b, d), jnp.float32),
        grid_spec=grid_spec,
        compiler_params=pltpu.CompilerParams(
            dimension_semantics=("parallel",)),
        cost_estimate=pl.CostEstimate(
            flops=flops, transcendentals=transcendentals,
            bytes_accessed=bytes_accessed),
    )(t2d, x_pad, freqs, phase, w1, wt, b1, w2, b2)
    return out[:T]


def ode_wrapper_forward(t, x, params):
    """Single ODEWrapper.forward(t, x): scalar t, x [B, D] -> [B, D]."""
    t_arr = jnp.asarray(t, jnp.float32).reshape(1)
    return ode_wrapper_forward_steps(t_arr, x[None], params)[0]


def ode_wrapper_reference(t, x, params):
    """Pure-JAX reference mirroring the PyTorch semantics."""
    w1, wt, b1, w2, b2 = params
    t_vec = jnp.asarray(t, jnp.float32) * jnp.ones((x.shape[0], 1), jnp.float32)
    k = jnp.arange(HALF, dtype=jnp.float32)[None, :]
    freqs = jnp.exp(-jnp.log(10000.0) * k / HALF)
    args = t_vec * freqs
    emb = jnp.concatenate([jnp.sin(args), jnp.cos(args)], axis=-1)
    h = x @ w1 + emb @ wt + b1
    h = h * jax.nn.sigmoid(h)
    return h @ w2 + b2


def make_params():
    key = jax.random.PRNGKey(42)
    k1, k2, k3 = jax.random.split(key, 3)
    w1 = jax.random.normal(k1, (D, H), jnp.float32) * (1.0 / np.sqrt(D))
    # fused [sin | cos] time-embedding projection
    wt = jax.random.normal(k2, (TEMB, H), jnp.float32) * (1.0 / np.sqrt(HALF))
    b1 = jnp.zeros((1, H), jnp.float32)
    w2 = jax.random.normal(k3, (H, D), jnp.float32) * (1.0 / np.sqrt(H))
    b2 = jnp.zeros((1, D), jnp.float32)
    return (w1, wt, b1, w2, b2)


if __name__ == "__main__":
    params = make_params()
    key = jax.random.PRNGKey(0)
    kx, kt = jax.random.split(key)

    T = 32  # number of fused ODE-step evaluations per pallas_call
    x_steps = jax.random.normal(kx, (T, B, D), jnp.float32)
    t_steps = jax.random.uniform(kt, (T,), dtype=jnp.float32)

    # Fused multi-step call: 16-step tiles -> 128-row matmuls, grid=(2,).
    out_steps = jax.block_until_ready(
        ode_wrapper_forward_steps(t_steps, x_steps, params))
    ref_steps = jax.vmap(ode_wrapper_reference, in_axes=(0, 0, None))(
        t_steps, x_steps, params)
    assert out_steps.shape == (T, B, D)
    assert jnp.allclose(out_steps, ref_steps, atol=1e-3, rtol=1e-3), \
        "multi-step mismatch vs reference"

    # Single-call API matching ODEWrapper.forward(t, x).
    t = 0.37
    out1 = jax.block_until_ready(ode_wrapper_forward(t, x_steps[0], params))
    ref1 = ode_wrapper_reference(t, x_steps[0], params)
    assert out1.shape == (B, D)
    assert jnp.allclose(out1, ref1, atol=1e-3, rtol=1e-3), "mismatch vs reference"

    print("KERNEL_OK")
</pallas_src>

<mosaic_0001>
module attributes {stable_mosaic.version = 11 : i64} {
  func.func @_ode_wrapper_kernel(%arg0: i32, %arg1: memref<16x1xf32, #tpu.memory_space<vmem>>, %arg2: memref<16x8x32xf32, #tpu.memory_space<vmem>>, %arg3: memref<1x32xf32, #tpu.memory_space<vmem>>, %arg4: memref<1x32xf32, #tpu.memory_space<vmem>>, %arg5: memref<32x64xf32, #tpu.memory_space<vmem>>, %arg6: memref<32x64xf32, #tpu.memory_space<vmem>>, %arg7: memref<1x64xf32, #tpu.memory_space<vmem>>, %arg8: memref<64x32xf32, #tpu.memory_space<vmem>>, %arg9: memref<1x32xf32, #tpu.memory_space<vmem>>, %arg10: memref<16x8x32xf32, #tpu.memory_space<vmem>>) attributes {dimension_semantics = [#tpu.dimension_semantics<parallel>], iteration_bounds = array<i64: 2>, scalar_prefetch = 0 : i64, scratch_operands = 0 : i64, tpu.core_type = #tpu.core_type<tc>, window_params = [{transform_indices = @transform_0, window_bounds = array<i64: 16, 1>}, {transform_indices = @transform_1, window_bounds = array<i64: 16, 8, 32>}, {pipeline_mode = #tpu.pipeline_mode<synchronous>, transform_indices = @transform_2, window_bounds = array<i64: 1, 32>}, {pipeline_mode = #tpu.pipeline_mode<synchronous>, transform_indices = @transform_3, window_bounds = array<i64: 1, 32>}, {pipeline_mode = #tpu.pipeline_mode<synchronous>, transform_indices = @transform_4, window_bounds = array<i64: 32, 64>}, {pipeline_mode = #tpu.pipeline_mode<synchronous>, transform_indices = @transform_5, window_bounds = array<i64: 32, 64>}, {pipeline_mode = #tpu.pipeline_mode<synchronous>, transform_indices = @transform_6, window_bounds = array<i64: 1, 64>}, {pipeline_mode = #tpu.pipeline_mode<synchronous>, transform_indices = @transform_7, window_bounds = array<i64: 64, 32>}, {pipeline_mode = #tpu.pipeline_mode<synchronous>, transform_indices = @transform_8, window_bounds = array<i64: 1, 32>}, {transform_indices = @transform_9, window_bounds = array<i64: 16, 8, 32>}]} {
    %c0 = arith.constant 0 : index
    %c0_0 = arith.constant 0 : index
    %0 = vector.load %arg1[%c0, %c0_0] : memref<16x1xf32, #tpu.memory_space<vmem>>, vector<16x1xf32>
    %c0_1 = arith.constant 0 : index
    %c0_2 = arith.constant 0 : index
    %1 = vector.load %arg3[%c0_1, %c0_2] : memref<1x32xf32, #tpu.memory_space<vmem>>, vector<1x32xf32>
    %2 = vector.broadcast %0 : vector<16x1xf32> to vector<16x32xf32>
    %3 = vector.broadcast %1 : vector<1x32xf32> to vector<16x32xf32>
    %4 = arith.mulf %2, %3 : vector<16x32xf32>
    %c0_3 = arith.constant 0 : index
    %c0_4 = arith.constant 0 : index
    %5 = vector.load %arg4[%c0_3, %c0_4] : memref<1x32xf32, #tpu.memory_space<vmem>>, vector<1x32xf32>
    %6 = vector.broadcast %5 : vector<1x32xf32> to vector<16x32xf32>
    %7 = arith.addf %4, %6 : vector<16x32xf32>
    %8 = math.sin %7 : vector<16x32xf32>
    %c0_5 = arith.constant 0 : index
    %c0_6 = arith.constant 0 : index
    %9 = vector.load %arg6[%c0_5, %c0_6] : memref<32x64xf32, #tpu.memory_space<vmem>>, vector<32x64xf32>
    %cst = arith.constant dense<0.000000e+00> : vector<16x64xf32>
    %10 = tpu.matmul %8, %9, %cst {dimension_numbers = #tpu.dot_dimension_numbers<[1], [0], [0], [1], [0, 0, 1, 1], [], []>, precision = #tpu.contract_precision<fp32>} : vector<16x32xf32>, vector<32x64xf32>, vector<16x64xf32> -> vector<16x64xf32>
    %c0_7 = arith.constant 0 : index
    %c0_8 = arith.constant 0 : index
    %11 = vector.load %arg7[%c0_7, %c0_8] : memref<1x64xf32, #tpu.memory_space<vmem>>, vector<1x64xf32>
    %12 = vector.broadcast %11 : vector<1x64xf32> to vector<16x64xf32>
    %13 = arith.addf %10, %12 : vector<16x64xf32>
    %c0_9 = arith.constant 0 : index
    %c0_10 = arith.constant 0 : index
    %c0_11 = arith.constant 0 : index
    %14 = vector.load %arg2[%c0_9, %c0_10, %c0_11] : memref<16x8x32xf32, #tpu.memory_space<vmem>>, vector<16x8x32xf32>
    %15 = vector.shape_cast %14 : vector<16x8x32xf32> to vector<128x32xf32>
    %c0_12 = arith.constant 0 : index
    %c0_13 = arith.constant 0 : index
    %16 = vector.load %arg5[%c0_12, %c0_13] : memref<32x64xf32, #tpu.memory_space<vmem>>, vector<32x64xf32>
    %cst_14 = arith.constant dense<0.000000e+00> : vector<128x64xf32>
    %17 = tpu.matmul %15, %16, %cst_14 {dimension_numbers = #tpu.dot_dimension_numbers<[1], [0], [0], [1], [0, 0, 1, 1], [], []>, precision = #tpu.contract_precision<fp32>} : vector<128x32xf32>, vector<32x64xf32>, vector<128x64xf32> -> vector<128x64xf32>
    %18 = vector.shape_cast %17 : vector<128x64xf32> to vector<16x8x64xf32>
    %19 = vector.shape_cast %13 : vector<16x64xf32> to vector<16x1x64xf32>
    %20 = vector.broadcast %19 : vector<16x1x64xf32> to vector<16x8x64xf32>
    %21 = arith.addf %18, %20 : vector<16x8x64xf32>
    %22 = arith.negf %21 : vector<16x8x64xf32>
    %23 = math.exp %22 : vector<16x8x64xf32>
    %cst_15 = arith.constant 1.000000e+00 : f32
    %24 = vector.broadcast %cst_15 : f32 to vector<16x8x64xf32>
    %25 = arith.addf %24, %23 : vector<16x8x64xf32>
    %26 = arith.divf %24, %25 : vector<16x8x64xf32>
    %27 = arith.mulf %21, %26 : vector<16x8x64xf32>
    %28 = vector.shape_cast %27 : vector<16x8x64xf32> to vector<128x64xf32>
    %c0_16 = arith.constant 0 : index
    %c0_17 = arith.constant 0 : index
    %29 = vector.load %arg8[%c0_16, %c0_17] : memref<64x32xf32, #tpu.memory_space<vmem>>, vector<64x32xf32>
    %cst_18 = arith.constant dense<0.000000e+00> : vector<128x32xf32>
    %30 = tpu.matmul %28, %29, %cst_18 {dimension_numbers = #tpu.dot_dimension_numbers<[1], [0], [0], [1], [0, 0, 1, 1], [], []>, precision = #tpu.contract_precision<fp32>} : vector<128x64xf32>, vector<64x32xf32>, vector<128x32xf32> -> vector<128x32xf32>
    %c0_19 = arith.constant 0 : index
    %c0_20 = arith.constant 0 : index
    %31 = vector.load %arg9[%c0_19, %c0_20] : memref<1x32xf32, #tpu.memory_space<vmem>>, vector<1x32xf32>
    %32 = vector.broadcast %31 : vector<1x32xf32> to vector<128x32xf32>
    %33 = arith.addf %30, %32 : vector<128x32xf32>
    %34 = vector.shape_cast %33 : vector<128x32xf32> to vector<16x8x32xf32>
    %c0_21 = arith.constant 0 : index
    %c0_22 = arith.constant 0 : index
    %c0_23 = arith.constant 0 : index
    %35 = vector.load %arg10[%c0_21, %c0_22, %c0_23] : memref<16x8x32xf32, #tpu.memory_space<vmem>>, vector<16x8x32xf32>
    tpu.vector_store %arg10[%c0_21, %c0_22, %c0_23], %34 {strides = array<i32>} : memref<16x8x32xf32, #tpu.memory_space<vmem>>, vector<16x8x32xf32>,
    return
  }
  func.func @transform_0(%arg0: i32) -> (i32, i32) {
    %c0_i32 = arith.constant 0 : i32
    %c0_i32_0 = arith.constant 0 : i32
    return %arg0, %c0_i32 : i32, i32
  }
  func.func @transform_1(%arg0: i32) -> (i32, i32, i32) {
    %c0_i32 = arith.constant 0 : i32
    %c0_i32_0 = arith.constant 0 : i32
    %c0_i32_1 = arith.constant 0 : i32
    return %arg0, %c0_i32, %c0_i32_0 : i32, i32, i32
  }
  func.func @transform_2(%arg0: i32) -> (i32, i32) {
    %c0_i32 = arith.constant 0 : i32
    %c0_i32_0 = arith.constant 0 : i32
    %c0_i32_1 = arith.constant 0 : i32
    return %c0_i32, %c0_i32_0 : i32, i32
  }
  func.func @transform_3(%arg0: i32) -> (i32, i32) {
    %c0_i32 = arith.constant 0 : i32
    %c0_i32_0 = arith.constant 0 : i32
    %c0_i32_1 = arith.constant 0 : i32
    return %c0_i32, %c0_i32_0 : i32, i32
  }
  func.func @transform_4(%arg0: i32) -> (i32, i32) {
    %c0_i32 = arith.constant 0 : i32
    %c0_i32_0 = arith.constant 0 : i32
    %c0_i32_1 = arith.constant 0 : i32
    return %c0_i32, %c0_i32_0 : i32, i32
  }
  func.func @transform_5(%arg0: i32) -> (i32, i32) {
    %c0_i32 = arith.constant 0 : i32
    %c0_i32_0 = arith.constant 0 : i32
    %c0_i32_1 = arith.constant 0 : i32
    return %c0_i32, %c0_i32_0 : i32, i32
  }
  func.func @transform_6(%arg0: i32) -> (i32, i32) {
    %c0_i32 = arith.constant 0 : i32
    %c0_i32_0 = arith.constant 0 : i32
    %c0_i32_1 = arith.constant 0 : i32
    return %c0_i32, %c0_i32_0 : i32, i32
  }
  func.func @transform_7(%arg0: i32) -> (i32, i32) {
    %c0_i32 = arith.constant 0 : i32
    %c0_i32_0 = arith.constant 0 : i32
    %c0_i32_1 = arith.constant 0 : i32
    return %c0_i32, %c0_i32_0 : i32, i32
  }
  func.func @transform_8(%arg0: i32) -> (i32, i32) {
    %c0_i32 = arith.constant 0 : i32
    %c0_i32_0 = arith.constant 0 : i32
    %c0_i32_1 = arith.constant 0 : i32
    return %c0_i32, %c0_i32_0 : i32, i32
  }
  func.func @transform_9(%arg0: i32) -> (i32, i32, i32) {
    %c0_i32 = arith.constant 0 : i32
    %c0_i32_0 = arith.constant 0 : i32
    %c0_i32_1 = arith.constant 0 : i32
    return %arg0, %c0_i32, %c0_i32_0 : i32, i32, i32
  }
}

</mosaic_0001>

<bundles_post_ra>
// kernel: ode_wrapper_forward_steps.1
= control target key start
LH: loop header
LB: loop body
LE: loop exit
PB: predicated region body
PF: predicated region fallthrough
CT: control target
= control target key end

     0   :  { %14 = vsyncpa [#allocation3], 0  ;;  %s6856_s0 = inlined_call_operand.vmem [shape: f32[32,1], index: 0, kind: input, shape index: {}]   ;;  %s6857_s1 = inlined_call_operand.hbm [shape: f32[32,8,32], index: 1, kind: input, shape index: {}]   ;;  %s6858_s2 = inlined_call_operand.vmem [shape: f32[1,32], index: 2, kind: input, shape index: {}]   ;;  %s6859_s3 = inlined_call_operand.vmem [shape: f32[1,32], index: 3, kind: input, shape index: {}]   ;;  %s6860_s4 = inlined_call_operand.vmem [shape: f32[32,64], index: 4, kind: input, shape index: {}]   ;;  %s6861_s5 = inlined_call_operand.vmem [shape: f32[32,64], index: 5, kind: input, shape index: {}]   ;;  %s6862_s6 = inlined_call_operand.vmem [shape: f32[1,64], index: 6, kind: input, shape index: {}]   ;;  %s6863_s7 = inlined_call_operand.vmem [shape: f32[64,32], index: 7, kind: input, shape index: {}]   ;;  %s6864_s8 = inlined_call_operand.vmem [shape: f32[1,32], index: 8, kind: input, shape index: {}]   ;;  %s6865_s9 = inlined_call_operand.hbm [shape: f32[32,8,32], index: 9, kind: output, shape index: {}]  }
   0x1   :  { %16 = vsyncpa [#allocation3 + $0x1], 0 }
   0x2   :  { %17 = vsyncpa [#allocation4], 0 }
   0x3   :  { %19 = vsyncpa [#allocation4 + $0x1], 0  ;;  %s5559_s30 = smov 0   ;;  %s5561_s10 = smov 0  }
   0x4   :  { %s5563_s11 = smov 0   ;;  %s5565_s12 = smov 0  }
   0x5 LB: > { %s5580_s13 = sadd.s32 4294967295, %s5493_s12   ;;  %s4026_s14 = sadd.s32 4294967294, %s5493_s12   ;;  %s5493_s12 = sphi %s5565_s12, %s6932_s12   ;;  %s5489_s11 = sphi %s5563_s11, %s6931_s11   ;;  %s5485_s10 = sphi %s5561_s10, %s6930_s10   ;;  %s5481_s30 = sphi %s5559_s30, %s6929_s30  }
   0x6   : > { %s5584_s15 = sadd.s32 1, %s5493_s12   ;;  %s58_s16 = sadd.s32 1, %s5489_s11 }
   0x7   : > { %s55_s17 = ssub.s32 %s5493_s12, %s5584_s15  ;;  %p65_p0 = scmp.ne.s32.totalorder %s5489_s11, %s5485_s10 }
   0x8   : > { %p56_p1 = scmp.eq.s32.totalorder %s55_s17, 0  ;;  %p66_p2 = scmp.eq.s32.totalorder %s5493_s12, 0 }
   0x9   : > { %p71_p3 = scmp.ne.s32.totalorder %s5485_s10, %s5481_s30  ;;  %p72_p4 = scmp.eq.s32.totalorder %s5580_s13, 0 }
   0xa   : > { %s5596_s18 = scalar_select %p56_p1, %s5489_s11, %s58_s16  }
   0xb   : > { %p5598_p5 = por %p66_p2, %p65_p0  ;;  %p5602_p6 = por %p72_p4, %p71_p3 }
   0xc   : > { %p242_p7 = scmp.eq.s32.totalorder %s5580_s13, 1  ;;  %p248_p8 = scmp.eq.s32.totalorder %s4026_s14, 1 }
   0xd   : > { %p5278_p10 = scmp.lt.s32.totalorder %s5493_s12, 2  ;;  %s298_s23 = sand.u32 1, %s5489_s11  }
   0xe   : > { %p5609_p11 = por %p242_p7, %p65_p0  ;;  %p5613_p12 = por %p248_p8, %p71_p3 }
   0xf   : > { %s4070_s24 = sshll.u32 %s5493_s12, 11  ;;  %s4029_s25 = sshll.u32 %s298_s23, 7 }
  0x10   : > { %s6895_s21 = scalar_select %p5609_p11, 1, 0 }
  0x11   : > { %s6896_s22 = scalar_select %p5613_p12, 1, 0 }
  0x12   : > { %s5622_s28 = scalar_lea.hbm %s6857_s1, %s4070_s24  ;;  %s302_s29 = scalar_lea.vmem [#allocation2], %s4029_s25 }
  0x13   : > { %s309_s14 = sshll.u32 %s302_s29, 4  ;;  %p5626_p13 = pnand %p5278_p10, %p5598_p5  ;;  %s5630_s14 = int_to_ptr.vmem [resolvable:$true] %s309_s14 }
  0x14   : > { %s5632_s17 = scalar_lea.sflag [#allocation3], %s298_s23  ;;  %s5397_s26 = scalar_lea.hbm %s5622_s28, 2048 }
  0x15   : > { %p5398_p0 = scmp.ne.s32.totalorder %s5622_s28, %s5397_s26  ;;  %p5399_p1 = pneg %p5626_p13 }
  0x16   : > { %s5402_s25 = scalar_lea.hbm %s6857_s1, 4096  ;;  %p5403_p4 = scmp.lt.u32.totalorder %s5622_s28, %s6857_s1 }
  0x17   : > { %p5400_p2 = pnand %p5399_p1, %p5398_p0  ;;  %p5404_p5 = scmp.lt.u32.totalorder %s5402_s25, %s5397_s26 }
  0x18   : > { %p5406_p8 = scmp.lt.u32.totalorder %s5397_s26, %s5622_s28 }
  0x19   : > { %p5401_p3 = pneg %p5400_p2  ;;  %p5405_p7 = por %p5404_p5, %p5403_p4 }
  0x1b   : > { %p5407_p10 = por %p5406_p8, %p5405_p7 }
  0x1d   : > { %p5408_p9 = pnand %p5407_p10, %p5401_p3 }
  0x1f   : > { %5411 = shalt.err (!%p5408_p9)
}
  0x20   : > { %s5412_s23 = scalar_lea.vmem %s5630_s14, 2048  ;;  %s5495_s24 = smov [#allocation2]  }
  0x21   : > { %p5413_p0 = scmp.ne.s32.totalorder %s5630_s14, %s5412_s23  ;;  %s5417_s19 = sshll.u32 %s5495_s24, 4  ;;  %s5418_s19 = int_to_ptr.vmem [resolvable:$false] %s5417_s19 }
  0x22   : > { %s5419_s27 = scalar_lea.vmem %s5418_s19, 4096  ;;  %p5420_p11 = scmp.lt.s32.totalorder %s5630_s14, %s5418_s19 }
  0x23   : > { %p5415_p2 = pnand %p5413_p0, %p5399_p1  ;;  %p5421_p4 = scmp.lt.s32.totalorder %s5419_s27, %s5412_s23 }
  0x25   : > { %p5416_p12 = pneg %p5415_p2  ;;  %p5422_p5 = por %p5421_p4, %p5420_p11 }
  0x27   : > { %p5423_p7 = pnand %p5422_p5, %p5416_p12 }
  0x29   : > { %5426 = shalt.err (!%p5423_p7)
}
  0x2a   : > { %s5496_s26 = smov 128   ;;  %s5497_s25 = smov 8  }
  0x2b   : > { %5273 = dma.hbm_to_vmem [thread:$0]  (!%p5626_p13), %s5622_s28, 2048, %s5630_s14, %s5632_s17, %s5496_s26, %s5496_s26, %s5497_s25  }
  0x2c   : > { %p4032_p9 = scmp.ge.s32.totalorder %s5493_s12, 1  ;;  %p317_p1 = scmp.lt.s32.totalorder %s5493_s12, 3 }
  0x2e   : > { %p318_p3 = pnand %p4032_p9, %p317_p1 }
  0x2f   : > { %s5663_s29 = sand.u32 (!%p318_p3), 1, %s5485_s10  }
  0x30   : > { %321 = sbr.rel (%p318_p3) target bundleno = 997 (0x3e5), region = 56  ;;  %s4033_s23 = sshll.u32 (!%p318_p3), %s5663_s29, 7 }
  0x31   : > { %s324_s24 = scalar_lea.sflag (!%p318_p3), [#allocation3], %s5663_s29  ;;  %s5669_s19 = scalar_lea.vmem (!%p318_p3), [#allocation2], %s4033_s23 }
  0x37   : > { %5472 = dma.done.wait (%p5602_p6), %s324_s24, 2048  }
  0x38   : > { %5474 = vsyncadd (%p5602_p6), %s324_s24, 4294965248  ;;  %s4035_s28 = sshll.u32 %s5580_s13, 1  ;;  %v5498_v0 = vmov 0   ;;  %v5682_v2 = vld [vmem:[%s6860_s4] sm:$0xff]  ;;  %v5687_v3 = vld [vmem:[%s6860_s4 + $0x8] sm:$0xff]  ;;  %vm624_vm0 = vcmask 261120  }
  0x39   : > { %5324 = vset.pattern.permute.xlu0 %v5498_v0  ;;  %p368_p11 = scmp.lt.s32.totalorder %s4035_s28, 3  ;;  %v1228_v4 = vand.u32 4294901760, %v5682_v2  ;;  %v1231_v5 = vand.u32 4294901760, %v5687_v3  ;;  %v5694_v7 = vld [vmem:[%s6860_s4 + $0x10] sm:$0xff]  ;;  %v5699_v8 = vld [vmem:[%s6860_s4 + $0x18] sm:$0xff]  ;;  %v1159_v11 = vld [vmem:[%s5669_s19] sm:$0xff] }
  0x3a   : > { %v1234_v9 = vand.u32 4294901760, %v5694_v7  ;;  %v1237_v10 = vand.u32 4294901760, %v5699_v8  ;;  %v1160_v12 = vld [vmem:[%s5669_s19 + $0x8] sm:$0xff]  ;;  %v1161_v13 = vld [vmem:[%s5669_s19 + $0x10] sm:$0xff]  ;;  %v1180_v15 = vsel %vm624_vm0, %v1159_v11, 0  ;;  %v1162_v18 = vld [vmem:[%s5669_s19 + $0x18] sm:$0xff] }
  0x3b   : > { %s6934_s28 = smov (!%p368_p11, %s4035_s28), 3  ;;  %v5710_v14 = vpack.c.bf16 %v1231_v5, %v1228_v4  ;;  %v1183_v16 = vsel %vm624_vm0, %v1160_v12, 0  ;;  %v1186_v17 = vsel %vm624_vm0, %v1161_v13, 0  ;;  %v1163_v19 = vld [vmem:[%s5669_s19 + $0x20] sm:$0xff]  ;;  %v1164_v20 = vld [vmem:[%s5669_s19 + $0x28] sm:$0xff]  ;;  %v5724_v22 = vand.u32 4294901760, %v1180_v15 }
  0x3c   : > { %s4036_s14 = sshll.u32 %s6934_s28, 3  ;;  %v5722_v21 = vpack.c.bf16 %v1237_v10, %v1234_v9  ;;  %v5726_v23 = vand.u32 4294901760, %v1183_v16  ;;  %v5728_v24 = vand.u32 4294901760, %v1186_v17  ;;  %v1165_v25 = vld [vmem:[%s5669_s19 + $0x30] sm:$0xff]  ;;  %v1166_v26 = vld [vmem:[%s5669_s19 + $0x38] sm:$0xff]  ;;  %v1189_v27 = vsel %vm624_vm0, %v1162_v18, 0 }
  0x3d   : > { %s371_s27 = scalar_lea.vmem %s6856_s0, %s4036_s14  ;;  %4919 = vmatprep.subr.bf16.mxu1 %v5710_v14  ;;  %v1192_v28 = vsel %vm624_vm0, %v1163_v19, 0  ;;  %v1195_v29 = vsel %vm624_vm0, %v1164_v20, 0  ;;  %v1198_v30 = vsel %vm624_vm0, %v1165_v25, 0  ;;  %v5739_v31 = vsub.f32 %v1180_v15, %v5724_v22  ;;  %v1167_v55 = vld [vmem:[%s5669_s19 + $0x40] sm:$0xff]  ;;  %v1168_v56 = vld [vmem:[%s5669_s19 + $0x48] sm:$0xff]  ;;  %v1169_v57 = vld [vmem:[%s5669_s19 + $0x50] sm:$0xff] }
  0x3e   : > { %v375_v1 = vld [vmem:[%s371_s27] sm:$0xff]  ;;  %v376_v6 = vld [vmem:[%s371_s27 + $0x8] sm:$0xff]  ;;  %4921 = vmatpush3.bf16.msra.mxu1 %v5710_v14  ;;  %v5742_v32 = vsub.f32 %v1183_v16, %v5726_v23  ;;  %v5745_v33 = vsub.f32 %v1186_v17, %v5728_v24  ;;  %v5747_v34 = vand.u32 4294901760, %v1189_v27  ;;  %v5750_v35 = vand.u32 4294901760, %v1192_v28  ;;  %s6757_s26 = scalar_lea.vmem [#allocation5], %s4033_s23  ;;  %s4071_s23 = sshll.u32 %s5580_s13, 11 }
  0x3f   : > { %380 = vperm.xlu0 %5324, %v375_v1   ;;  %4923 = vmatprep.subr.bf16.mxu1 %v5722_v21  ;;  %v5752_v36 = vand.u32 4294901760, %v1195_v29  ;;  %v5754_v37 = vand.u32 4294901760, %v1198_v30  ;;  %v1201_v38 = vsel %vm624_vm0, %v1166_v26, 0  ;;  %v1298_v39 = vand.u32 4294901760, %v5739_v31  ;;  %v1171_v15 = vld [vmem:[%s5669_s19 + $0x60] sm:$0xff]  ;;  %v1172_v16 = vld [vmem:[%s5669_s19 + $0x68] sm:$0xff]  ;;  %s6803_s28 = scalar_lea.hbm %s6865_s9, %s4071_s23 }
  0x40   : > { %v1308_v40 = vand.u32 4294901760, %v5742_v32  ;;  %v1318_v41 = vand.u32 4294901760, %v5745_v33  ;;  %v5761_v42 = vsub.f32 %v1189_v27, %v5747_v34  ;;  %v5764_v43 = vsub.f32 %v1192_v28, %v5750_v35  ;;  %s3941_s25 = sshll.u32 %s6757_s26, 4  ;;  %s3928_s13 = scalar_lea.sflag [#allocation4], %s5663_s29  ;;  %s6805_s25 = int_to_ptr.vmem [resolvable:$true] %s3941_s25 }
  0x41   : > { %v5767_v44 = vsub.f32 %v1195_v29, %v5752_v36  ;;  %v5770_v45 = vsub.f32 %v1198_v30, %v5754_v37  ;;  %v5772_v46 = vand.u32 4294901760, %v1201_v38  ;;  %v1299_v47 = vsub.f32 %v5739_v31, %v1298_v39  ;;  %s5427_s14 = scalar_lea.vmem %s6805_s25, 2048  ;;  %p6926_p12 = scmp.ne.s32.totalorder %s6895_s21, 0 }
  0x42   : > { %4925 = vmatpush3.bf16.msra.mxu1 %v5722_v21  ;;  %v1309_v48 = vsub.f32 %v5742_v32, %v1308_v40  ;;  %v1319_v49 = vsub.f32 %v5745_v33, %v1318_v41  ;;  %v1328_v50 = vand.u32 4294901760, %v5761_v42  ;;  %v1338_v51 = vand.u32 4294901760, %v5764_v43  ;;  %p5428_p6 = scmp.ne.s32.totalorder %s6805_s25, %s5427_s14  ;;  %s5506_s16 = smov [#allocation5]  }
  0x43   : > { %385 = vperm.xlu0 %5324, %v376_v6   ;;  %v6872_v52 = vand.u32 4294901760, %v5767_v44  ;;  %v6871_v53 = vand.u32 4294901760, %v5770_v45  ;;  %v5789_v54 = vsub.f32 %v1201_v38, %v5772_v46  ;;  %v1300_v58 = vand.u32 4294901760, %v1299_v47  ;;  %v1170_v6 = vld [vmem:[%s5669_s19 + $0x58] sm:$0xff]  ;;  %s5431_s17 = sshll.u32 %s5506_s16, 4  ;;  %s5432_s17 = int_to_ptr.vmem [resolvable:$false] %s5431_s17 }
  0x44   : > { %v1310_v59 = vand.u32 4294901760, %v1309_v48  ;;  %v1320_v60 = vand.u32 4294901760, %v1319_v49  ;;  %v1329_v61 = vsub.f32 %v5761_v42, %v1328_v50  ;;  %v1339_v62 = vsub.f32 %v5764_v43, %v1338_v51  ;;  %p5429_p13 = pnand %p5428_p6, %p6926_p12  ;;  %p5434_p10 = scmp.lt.s32.totalorder %s6805_s25, %s5432_s17 }
  0x45   : > { %v1349_v63 = vsub.f32 %v5767_v44, %v6872_v52  ;;  %v1359_v0 = vsub.f32 %v5770_v45, %v6871_v53  ;;  %v6869_v1 = vand.u32 4294901760, %v5789_v54  ;;  %4446 = vmatprep.mubr.f32.mxu1 %v1300_v58  ;;  %v1204_v11 = vsel %vm624_vm0, %v1167_v55, 0 }
  0x46   : > { %v1207_v12 = vsel %vm624_vm0, %v1168_v56, 0  ;;  %v1210_v13 = vsel %vm624_vm0, %v1169_v57, 0  ;;  %4447 = vmatmul.mubr.f32.vlgmr.msra.gmra.mrb[0].mxu1 %v1310_v59  ;;  %v1330_v17 = vand.u32 4294901760, %v1329_v61  ;;  %v1340_v18 = vand.u32 4294901760, %v1339_v62  ;;  %p5430_p8 = pneg %p5429_p13 }
  0x47   : > { %v1350_v19 = vand.u32 4294901760, %v1349_v63  ;;  %v1360_v20 = vand.u32 4294901760, %v1359_v0  ;;  %4449 = vmatprep.mubr.f32.mxu1 %v1320_v60  ;;  %v5813_v25 = vand.u32 4294901760, %v1204_v11  ;;  %v5815_v26 = vand.u32 4294901760, %v1207_v12 }
  0x48   : > { %v5817_v27 = vand.u32 4294901760, %v1210_v13  ;;  %v1213_v28 = vsel %vm624_vm0, %v1170_v6, 0  ;;  %v1369_v29 = vsub.f32 %v5789_v54, %v6869_v1  ;;  %v1216_v38 = vsel %vm624_vm0, %v1171_v15, 0 }
  0x49   : > { %v5823_v30 = vand.u32 4294901760, %v1213_v28  ;;  %v1219_v47 = vsel %vm624_vm0, %v1172_v16, 0  ;;  %v5828_v48 = vsub.f32 %v1204_v11, %v5813_v25  ;;  %v5831_v49 = vsub.f32 %v1207_v12, %v5815_v26  ;;  %v1173_v16 = vld [vmem:[%s5669_s19 + $0x70] sm:$0xff] }
  0x4a   : > { %v5834_v55 = vsub.f32 %v1210_v13, %v5817_v27  ;;  %v5836_v56 = vand.u32 4294901760, %v1216_v38  ;;  %4450 = vmatmul.mubr.f32.gmra.mrb[2].mxu1 %v1330_v17  ;;  %v5841_v58 = vand.u32 4294901760, %v1219_v47  ;;  %v5846_v59 = vsub.f32 %v5682_v2, %v1228_v4  ;;  %v1174_v17 = vld [vmem:[%s5669_s19 + $0x78] sm:$0xff]  ;;  %s5433_s19 = scalar_lea.vmem %s5432_s17, 4096 }
  0x4b   : > { %v5839_v57 = vsub.f32 %v1213_v28, %v5823_v30  ;;  %v5851_v60 = vsub.f32 %v5687_v3, %v1231_v5  ;;  %4452 = vmatprep.mubr.f32.mxu1 %v1340_v18  ;;  %v6868_v61 = vand.u32 4294901760, %v5828_v48  ;;  %v6867_v62 = vand.u32 4294901760, %v5831_v49  ;;  %p5435_p0 = scmp.lt.s32.totalorder %s5433_s19, %s5427_s14 }
  0x4c   : > { %v6870_v63 = vand.u32 4294901760, %v5834_v55  ;;  %v5857_v0 = vsub.f32 %v1216_v38, %v5836_v56  ;;  %v1459_v4 = vand.u32 4294901760, %v5846_v59  ;;  %v5866_v5 = vsub.f32 %v1219_v47, %v5841_v58 }
  0x4d   : > { %v6875_v2 = vand.u32 4294901760, %v5839_v57  ;;  %v1466_v6 = vand.u32 4294901760, %v5851_v60  ;;  %v1379_v3 = vsub.f32 %v5828_v48, %v6868_v61  ;;  %v1370_v11 = vand.u32 4294901760, %v1369_v29  ;;  %p5436_p2 = por %p5435_p0, %p5434_p10 }
  0x4e   : > { %4453 = vmatmul.mubr.f32.gmra.mrb[4].mxu1 %v1350_v19  ;;  %v1389_v12 = vsub.f32 %v5831_v49, %v6867_v62  ;;  %v1460_v13 = vsub.f32 %v5846_v59, %v1459_v4  ;;  %v1399_v19 = vsub.f32 %v5834_v55, %v6870_v63  ;;  %v6873_v28 = vand.u32 4294901760, %v5857_v0 }
  0x4f   : > { %v1467_v15 = vsub.f32 %v5851_v60, %v1466_v6  ;;  %4455 = vmatprep.mubr.f32.mxu1 %v1360_v20  ;;  %v1380_v18 = vand.u32 4294901760, %v1379_v3  ;;  %v1409_v29 = vsub.f32 %v5839_v57, %v6875_v2  ;;  %v6874_v62 = vand.u32 4294901760, %v5866_v5  ;;  %p5437_p4 = pnand %p5436_p2, %p5430_p8 }
  0x50   : > { %v1461_v38 = vand.u32 4294901760, %v1460_v13  ;;  %v1222_v61 = vsel %vm624_vm0, %v1173_v16, 0  ;;  %v1225_v1 = vsel %vm624_vm0, %v1174_v17, 0  ;;  %v1472_v20 = vsub.f32 %v5694_v7, %v1234_v9 }
  0x51   : > { %v1468_v47 = vand.u32 4294901760, %v1467_v15  ;;  %v1390_v3 = vand.u32 4294901760, %v1389_v12  ;;  %v5892_v53 = vand.u32 4294901760, %v1222_v61  ;;  %v5894_v52 = vand.u32 4294901760, %v1225_v1 }
  0x52   : > { %4456 = vmatmul.mubr.f32.gmra.mrb[6].mxu1 %v1370_v11  ;;  %v1400_v13 = vand.u32 4294901760, %v1399_v19  ;;  %v1419_v15 = vsub.f32 %v5857_v0, %v6873_v28  ;;  %v1473_v16 = vand.u32 4294901760, %v1472_v20  ;;  %v1479_v17 = vsub.f32 %v5699_v8, %v1237_v10 }
  0x53   : > { %v4926_v63 = vpack.c.bf16 %v1468_v47, %v1461_v38  ;;  %4458 = vmatprep.mubr.f32.mxu1 %v1380_v18  ;;  %v5903_v7 = vsub.f32 %v1222_v61, %v5892_v53  ;;  %v5906_v9 = vsub.f32 %v1225_v1, %v5894_v52  ;;  %v1410_v18 = vand.u32 4294901760, %v1409_v29 }
  0x54   : > { %v1474_v11 = vsub.f32 %v1472_v20, %v1473_v16  ;;  %v1480_v12 = vand.u32 4294901760, %v1479_v17  ;;  %v1429_v19 = vsub.f32 %v5866_v5, %v6874_v62  ;;  %v1420_v10 = vand.u32 4294901760, %v1419_v15 }
  0x55   : > { %4927 = vmatprep.subr.bf16.mxu1 %v4926_v63  ;;  %v1438_v38 = vand.u32 4294901760, %v5903_v7  ;;  %v1448_v8 = vand.u32 4294901760, %v5906_v9 }
  0x56   : > { %4929 = vmatpush3.bf16.msra.mxu1 %v4926_v63  ;;  %v1475_v61 = vand.u32 4294901760, %v1474_v11  ;;  %v1481_v47 = vsub.f32 %v1479_v17, %v1480_v12  ;;  %v5913_v28 = vpack.c.bf16 %v1480_v12, %v1473_v16  ;;  %v1430_v29 = vand.u32 4294901760, %v1429_v19 }
  0x57   : > { %4459 = vmatmul.mubr.f32.gmra.mrb[8].mxu1 %v1390_v3  ;;  %v1439_v1 = vsub.f32 %v5903_v7, %v1438_v38  ;;  %v1449_v3 = vsub.f32 %v5906_v9, %v1448_v8  ;;  %v4938_v16 = vpack.c.bf16 %v1479_v17, %v1472_v20  ;;  %v614_v20 = vld [vmem:[%s6861_s5 + $0x8] sm:$0xff]  ;;  %v615_v17 = vld [vmem:[%s6861_s5 + $0x10] sm:$0xff] }
  0x58   : > { %4461 = vmatprep.mubr.f32.mxu1 %v1400_v13  ;;  %v1482_v63 = vand.u32 4294901760, %v1481_v47  ;;  %v4934_v13 = vpack.c.bf16 %v5851_v60, %v5846_v59  ;;  %v635_v12 = vand.u32 4294901760, %v614_v20  ;;  %v616_v59 = vld [vmem:[%s6861_s5 + $0x18] sm:$0xff]  ;;  %v638_v60 = vand.u32 4294901760, %v615_v17 }
  0x59   : > { %v1440_v62 = vand.u32 4294901760, %v1439_v1  ;;  %v1450_v15 = vand.u32 4294901760, %v1449_v3 }
  0x5a   : > { %v4930_v2 = vpack.c.bf16 %v1482_v63, %v1475_v61 }
  0x5b   : > { %4462 = vmatmul.mubr.f32.gmra.mrb[10].mxu1 %v1410_v18 }
  0x5c   : > { %4464 = vmatprep.mubr.f32.mxu1 %v1420_v10  ;;  %4931 = vmatprep.subr.bf16.mxu1 %v4930_v2  ;;  %v729_v10 = vsub.f32 %v614_v20, %v635_v12 }
  0x5d   : > { %4933 = vmatpush3.bf16.msra.mxu1 %v4930_v2  ;;  %v613_v2 = vld [vmem:[%s6861_s5] sm:$0xff] }
  0x5e   : > { %4935 = vmatprep.subr.bf16.mxu1 %v4934_v13  ;;  %v632_v11 = vand.u32 4294901760, %v613_v2  ;;  %v730_v47 = vand.u32 4294901760, %v729_v10 }
  0x5f   : > { %4465 = vmatmul.mubr.f32.gmra.mrb[12].mxu1 %v1430_v29 }
  0x60   : > { %4467 = vmatprep.mubr.f32.mxu1 %v1440_v62  ;;  %v4950_v62 = vpack.c.bf16 %v1466_v6, %v1459_v4  ;;  %v641_v4 = vand.u32 4294901760, %v616_v59  ;;  %v5964_v6 = vpack.c.bf16 %v635_v12, %v632_v11  ;;  %v722_v19 = vsub.f32 %v613_v2, %v632_v11 }
  0x61   : > { %v731_v63 = vsub.f32 %v729_v10, %v730_v47 }
  0x62   : > { %v5966_v18 = vpack.c.bf16 %v641_v4, %v638_v60  ;;  %4871 = vmatprep.subr.bf16.mxu0 %v5964_v6  ;;  %v723_v61 = vand.u32 4294901760, %v722_v19 }
  0x63   : > { %4468 = vmatmul.mubr.f32.gmra.mrb[14].mxu1 %v1450_v15  ;;  %4873 = vmatpush3.bf16.msra.mxu0 %v5964_v6  ;;  %v732_v3 = vand.u32 4294901760, %v731_v63  ;;  %v736_v15 = vsub.f32 %v615_v17, %v638_v60 }
  0x64   : > { %4478 = vmatprep.mubr.f32.mxu1 %v5724_v22  ;;  %4875 = vmatprep.subr.bf16.mxu0 %v5966_v18  ;;  %v724_v1 = vsub.f32 %v722_v19, %v723_v61 }
  0x65   : > { %v737_v2 = vand.u32 4294901760, %v736_v15 }
  0x66   : > { %v725_v29 = vand.u32 4294901760, %v724_v1 }
  0x67   : > { %4479 = vmatmul.mubr.f32.vlgmr.msra.gmra.mrb[0].mxu1 %v5726_v23  ;;  %4877 = vmatpush3.bf16.msra.mxu0 %v5966_v18  ;;  %v738_v11 = vsub.f32 %v736_v15, %v737_v2 }
  0x68   : > { %4481 = vmatprep.mubr.f32.mxu1 %v5728_v24  ;;  %4937 = vmatpush3.bf16.msra.mxu1 %v4934_v13  ;;  %v5982_v13 = vpack.c.bf16 %v732_v3, %v725_v29 }
  0x69   : > { %4939 = vmatprep.subr.bf16.mxu1 %v4938_v16  ;;  %v739_v17 = vand.u32 4294901760, %v738_v11 }
  0x6a   : > { %4879 = vmatprep.subr.bf16.mxu0 %v5982_v13 }
  0x6b   : > { %4482 = vmatmul.mubr.f32.gmra.mrb[2].mxu1 %v5747_v34 }
  0x6c   : > { %4484 = vmatprep.mubr.f32.mxu1 %v5750_v35  ;;  %4941 = vmatpush3.bf16.msra.mxu1 %v4938_v16  ;;  %v743_v16 = vsub.f32 %v616_v59, %v641_v4 }
  0x6d   : > { %4943 = vmatprep.subr.bf16.mxu1 %v5710_v14 }
  0x6e   : > { %v744_v20 = vand.u32 4294901760, %v743_v16 }
  0x6f   : > { %4485 = vmatmul.mubr.f32.gmra.mrb[4].mxu1 %v5752_v36 }
  0x70   : > { %4487 = vmatprep.mubr.f32.mxu1 %v5754_v37  ;;  %v745_v12 = vsub.f32 %v743_v16, %v744_v20 }
  0x72   : > { %v746_v59 = vand.u32 4294901760, %v745_v12 }
  0x73   : > { %4488 = vmatmul.mubr.f32.gmra.mrb[6].mxu1 %v5772_v46 }
  0x74   : > { %4490 = vmatprep.mubr.f32.mxu1 %v5813_v25  ;;  %v5993_v60 = vpack.c.bf16 %v746_v59, %v739_v17  ;;  %v5500_v59 = vmov 2475754826  }
  0x77   : > { %4491 = vmatmul.mubr.f32.gmra.mrb[8].mxu1 %v5815_v26 }
  0x78   : > { %4493 = vmatprep.mubr.f32.mxu1 %v5817_v27 }
  0x7b   : > { %4494 = vmatmul.mubr.f32.gmra.mrb[10].mxu1 %v5823_v30 }
  0x7c   : > { %4496 = vmatprep.mubr.f32.mxu1 %v5836_v56 }
  0x7f   : > { %4497 = vmatmul.mubr.f32.gmra.mrb[12].mxu1 %v5841_v58 }
  0x80   : > { %4499 = vmatprep.mubr.f32.mxu1 %v5892_v53 }
  0x83   : > { %4500 = vmatmul.mubr.f32.gmra.mrb[14].mxu1 %v5894_v52 }
  0x84   : > { %4510 = vmatprep.mubr.f32.mxu1 %v5739_v31  ;;  %v5995_v31 = vpack.c.bf16 %v729_v10, %v722_v19  ;;  %v6033_v10 = vpack.c.bf16 %v744_v20, %v737_v2 }
  0x87   : > { %4511 = vmatmul.mubr.f32.vlgmr.msra.gmra.mrb[0].mxu1 %v5742_v32  ;;  %v6003_v32 = vpack.c.bf16 %v743_v16, %v736_v15 }
  0x88   : > { %4513 = vmatprep.mubr.f32.mxu1 %v5745_v33  ;;  %4945 = vmatpush3.bf16.msra.mxu1 %v5710_v14  ;;  %v6898_v33 = vand.u32 4294901760, %v5767_v44 }
  0x89   : > { %4947 = vmatprep.subr.bf16.mxu1 %v5722_v21 }
  0x8b   : > { %4514 = vmatmul.mubr.f32.gmra.mrb[2].mxu1 %v5761_v42  ;;  %v4037_v42 = vld [vmem:[%s6858_s2] ss:$0 sm:$0xff] }
  0x8c   : > { %4516 = vmatprep.mubr.f32.mxu1 %v5764_v43  ;;  %4949 = vmatpush3.bf16.msra.mxu1 %v5722_v21  ;;  %v6902_v43 = vand.u32 4294901760, %v5831_v49 }
  0x8d   : > { %4951 = vmatprep.subr.bf16.mxu1 %v4950_v62 }
  0x8f   : > { %4517 = vmatmul.mubr.f32.gmra.mrb[4].mxu1 %v5767_v44  ;;  %v4038_v44 = vld [vmem:[%s6859_s3] ss:$0 sm:$0xff] }
  0x90   : > { %4519 = vmatprep.mubr.f32.mxu1 %v5770_v45 }
  0x93   : > { %4520 = vmatmul.mubr.f32.gmra.mrb[6].mxu1 %v5789_v54 }
  0x94   : > { %4522 = vmatprep.mubr.f32.mxu1 %v5828_v48 }
  0x97   : > { %4523 = vmatmul.mubr.f32.gmra.mrb[8].mxu1 %v5831_v49 }
  0x98   : > { %4525 = vmatprep.mubr.f32.mxu1 %v5834_v55 }
  0x9b   : > { %4526 = vmatmul.mubr.f32.gmra.mrb[10].mxu1 %v5839_v57 }
  0x9c   : > { %4528 = vmatprep.mubr.f32.mxu1 %v5857_v0 }
  0x9f   : > { %4529 = vmatmul.mubr.f32.gmra.mrb[12].mxu1 %v5866_v5 }
  0xa0   : > { %4531 = vmatprep.mubr.f32.mxu1 %v5903_v7 }
  0xa3   : > { %4532 = vmatmul.mubr.f32.gmra.mrb[14].mxu1 %v5906_v9 }
  0xa4   : > { %4542 = vmatprep.mubr.f32.mxu1 %v1298_v39  ;;  %v6899_v39 = vand.u32 4294901760, %v5770_v45 }
  0xa7   : > { %4543 = vmatmul.mubr.f32.vlgmr.msra.gmra.mrb[0].mxu1 %v1308_v40  ;;  %v6900_v40 = vand.u32 4294901760, %v5789_v54  ;;  %v6023_v54 = vpack.c.bf16 %v730_v47, %v723_v61  ;;  %v6906_v61 = vand.u32 4294901760, %v5866_v5 }
  0xa8   : > { %4545 = vmatprep.mubr.f32.mxu1 %v1318_v41  ;;  %4953 = vmatpush3.bf16.msra.mxu1 %v4950_v62  ;;  %v6901_v41 = vand.u32 4294901760, %v5828_v48  ;;  %v6905_v62 = vand.u32 4294901760, %v5857_v0 }
  0xa9   : > { %4955 = vmatprep.subr.bf16.mxu1 %v5913_v28 }
  0xab   : > { %4546 = vmatmul.mubr.f32.gmra.mrb[2].mxu1 %v1328_v50  ;;  %v6903_v50 = vand.u32 4294901760, %v5834_v55 }
  0xac   : > { %4548 = vmatprep.mubr.f32.mxu1 %v1338_v51  ;;  %4957 = vmatpush3.bf16.msra.mxu1 %v5913_v28  ;;  %v6904_v28 = vand.u32 4294901760, %v5839_v57 }
  0xad   : > { %4959 = vmatprep.subr.bf16.mxu1 %v5710_v14 }
  0xaf   : > { %4549 = vmatmul.mubr.f32.gmra.mrb[4].mxu1 %v6898_v33 }
  0xb0   : > { %4551 = vmatprep.mubr.f32.mxu1 %v6899_v39  ;;  %v5501_v39 = vmov 2131351028  }
  0xb3   : > { %4552 = vmatmul.mubr.f32.gmra.mrb[6].mxu1 %v6900_v40 }
  0xb4   : > { %4554 = vmatprep.mubr.f32.mxu1 %v6901_v41  ;;  %v5502_v41 = vmov 2102212464  }
  0xb7   : > { %4555 = vmatmul.mubr.f32.gmra.mrb[8].mxu1 %v6902_v43  ;;  %v5503_v43 = vmov 920167782  }
  0xb8   : > { %4557 = vmatprep.mubr.f32.mxu1 %v6903_v50 }
  0xbb   : > { %4558 = vmatmul.mubr.f32.gmra.mrb[10].mxu1 %v6904_v28 }
  0xbc   : > { %4560 = vmatprep.mubr.f32.mxu1 %v6905_v62  ;;  %v5504_v62 = vmov 1326507024  }
  0xbe   : > { %v381_v45 = vpop.permute.xlu0 %380 }
  0xbf   : > { %v394_v51 = vmul.f32 %v4037_v42, %v381_v45  ;;  %4561 = vmatmul.mubr.f32.gmra.mrb[12].mxu1 %v6906_v61 }
  0xc0   : > { %4563 = vmatprep.mubr.f32.mxu1 %v1438_v38  ;;  %v5499_v38 = vmov 683565275  }
  0xc1   : > { %v6025_v48 = vadd.f32 %v4038_v44, %v394_v51 }
  0xc2   : > { %v386_v49 = vpop.permute.xlu0 %385 }
  0xc3   : > { %v405_v55 = vand.u32 2147483647, %v6025_v48  ;;  %v408_v4 = vand.u32 2139095040, %v6025_v48  ;;  %v395_v19 = vmul.f32 %v4037_v42, %v386_v49  ;;  %4564 = vmatmul.mubr.f32.gmra.mrb[14].mxu1 %v1448_v8  ;;  %vm407_vm15 = vcmp.lt.s32.totalorder %v6025_v48, 0 }
  0xc4   : > { %4574 = vmatprep.mubr.f32.mxu1 %v5724_v22 }
  0xc5   : > { %v409_v1 = vshrl.u32 %v408_v4, 23  ;;  %v6035_v63 = vadd.f32 %v4038_v44, %v395_v19  ;;  %v412_v57 = vand.u32 8388607, %v405_v55 }
  0xc7   : > { %v4039_v0 = vadd.s32 4294967169, %v409_v1  ;;  %v512_v47 = vand.u32 2139095040, %v6035_v63  ;;  %v413_v3 = vor.u32 8388608, %v412_v57  ;;  %v509_v5 = vand.u32 2147483647, %v6035_v63  ;;  %4575 = vmatmul.mubr.f32.vlgmr.msra.gmra.mrb[0].mxu1 %v5726_v23 }
  0xc8   : > { %4577 = vmatprep.mubr.f32.mxu1 %v5728_v24  ;;  %4961 = vmatpush3.bf16.msra.mxu1 %v5710_v14 }
  0xc9   : > { %v415_v29 = vadd.s32 1, %v4039_v0  ;;  %v513_v15 = vshrl.u32 %v512_v47, 23  ;;  %v6049_v7 = vshll.u32 %v413_v3, 8  ;;  %v516_v12 = vand.u32 8388607, %v509_v5  ;;  %4963 = vmatprep.subr.bf16.mxu1 %v5722_v21 }
  0xcb   : > { %vm416_vm1 = vcmp.gt.s32.totalorder %v415_v29, 0  ;;  %v4043_v2 = vadd.s32 4294967169, %v513_v15  ;;  %4578 = vmatmul.mubr.f32.gmra.mrb[2].mxu1 %v5747_v34 }
  0xcc   : > { %v417_v16 = vsel %vm416_vm1, %v415_v29, 0  ;;  %4580 = vmatprep.mubr.f32.mxu1 %v5750_v35  ;;  %4965 = vmatpush3.bf16.msra.mxu1 %v5722_v21  ;;  %vm406_vm1 = vcmp.le.f32.partialorder %v405_v55, 0.7853982 }
  0xcd   : > { %v418_v20 = vshrl.u32 %v417_v16, 5  ;;  %v419_v11 = vand.u32 31, %v417_v16  ;;  %v519_v17 = vadd.s32 1, %v4043_v2 }
  0xcf   : > { %v420_v9 = vsub.s32 32, %v419_v11  ;;  %v422_v8 = vshll.u32 %v5499_v38, %v419_v11  ;;  %v425_v33 = vshll.u32 %v5500_v59, %v419_v11  ;;  %v428_v40 = vshll.u32 %v5501_v39, %v419_v11  ;;  %4581 = vmatmul.mubr.f32.gmra.mrb[4].mxu1 %v5752_v36 }
  0xd0   : > { %v431_v42 = vshll.u32 %v5502_v41, %v419_v11  ;;  %v434_v50 = vshll.u32 %v5503_v43, %v419_v11  ;;  %vm437_vm2 = vcmp.lt.s32.totalorder %v418_v20, 1  ;;  %vm439_vm3 = vcmp.lt.s32.totalorder %v418_v20, 3  ;;  %4583 = vmatprep.mubr.f32.mxu1 %v5754_v37 }
  0xd1   : > { %v423_v44 = vshrl.u32 %v5500_v59, %v420_v9  ;;  %v426_v14 = vshrl.u32 %v5501_v39, %v420_v9  ;;  %v429_v45 = vshrl.u32 %v5502_v41, %v420_v9  ;;  %v421_v51 = vshrl.u32 %v5499_v38, %v420_v9 }
  0xd2   : > { %v432_v28 = vshrl.u32 %v5503_v43, %v420_v9  ;;  %v435_v49 = vshrl.u32 %v5504_v62, %v420_v9  ;;  %vm520_vm4 = vcmp.gt.s32.totalorder %v519_v17, 0  ;;  %vm440_vm5 = vcmp.lt.s32.totalorder %v418_v20, 4 }
  0xd3   : > { %v424_v4 = vor.u32 %v423_v44, %v422_v8  ;;  %v427_v19 = vor.u32 %v426_v14, %v425_v33  ;;  %v430_v1 = vor.u32 %v429_v45, %v428_v40  ;;  %v521_v0 = vsel %vm520_vm4, %v519_v17, 0  ;;  %4584 = vmatmul.mubr.f32.gmra.mrb[6].mxu1 %v5772_v46 }
  0xd4   : > { %v433_v61 = vor.u32 %v432_v28, %v431_v42  ;;  %v436_v57 = vor.u32 %v435_v49, %v434_v50  ;;  %v517_v11 = vor.u32 8388608, %v516_v12  ;;  %vm438_vm6 = vcmp.lt.s32.totalorder %v418_v20, 2  ;;  %4586 = vmatprep.mubr.f32.mxu1 %v5813_v25 }
  0xd5   : > { %v441_v47 = vsel %vm437_vm2, %v421_v51, %v424_v4  ;;  %v442_v29 = vsel %vm440_vm5, %v430_v1, 2102212464  ;;  %v445_v3 = vsel %vm437_vm2, %v424_v4, %v427_v19  ;;  %v449_v15 = vsel %vm437_vm2, %v427_v19, %v430_v1 }
  0xd6   : > { %v443_v16 = vsel %vm439_vm3, %v427_v19, %v442_v29  ;;  %v446_v21 = vsel %vm440_vm5, %v433_v61, 920167782  ;;  %v450_v2 = vsel %vm440_vm5, %v436_v57, 1326507024  ;;  %v523_v17 = vand.u32 31, %v521_v0 }
  0xd7   : > { %v447_v9 = vsel %vm439_vm3, %v430_v1, %v446_v21  ;;  %v451_v8 = vsel %vm439_vm3, %v433_v61, %v450_v2  ;;  %v444_v33 = vsel %vm438_vm6, %v441_v47, %v443_v16  ;;  %v522_v12 = vshrl.u32 %v521_v0, 5  ;;  %4587 = vmatmul.mubr.f32.gmra.mrb[8].mxu1 %v5815_v26 }
  0xd8   : > { %v448_v40 = vsel %vm438_vm6, %v445_v3, %v447_v9  ;;  %v452_v42 = vsel %vm438_vm6, %v449_v15, %v451_v8  ;;  %v524_v51 = vsub.s32 32, %v523_v17  ;;  %v6079_v28 = vshll.u32 %v517_v11, 8  ;;  %4589 = vmatprep.mubr.f32.mxu1 %v5817_v27 }
  0xd9   : > { %v6070_v50 = vmul.u32.u64.low %v6049_v7, %v452_v42  ;;  %v6071_v44 = vmul.u32.u64.high %v6049_v7, %v452_v42, %v6070_v50  ;;  %v6074_v14 = vmul.u32.u64.low %v6049_v7, %v448_v40  ;;  %v6075_v45 = vmul.u32.u64.high %v6049_v7, %v448_v40, %v6074_v14 }
  0xda   : > { %v460_v20 = vmul.u32 %v6049_v7, %v444_v33  ;;  %v526_v49 = vshll.u32 %v5499_v38, %v523_v17  ;;  %v529_v4 = vshll.u32 %v5500_v59, %v523_v17  ;;  %v532_v19 = vshll.u32 %v5501_v39, %v523_v17 }
  0xdb   : > { %v527_v1 = vshrl.u32 %v5500_v59, %v524_v51  ;;  %v530_v61 = vshrl.u32 %v5501_v39, %v524_v51  ;;  %v533_v57 = vshrl.u32 %v5502_v41, %v524_v51  ;;  %v535_v47 = vshll.u32 %v5502_v41, %v523_v17  ;;  %4590 = vmatmul.mubr.f32.gmra.mrb[10].mxu1 %v5823_v30 }
  0xdc   : > { %vm462_vm7 = vc.u32 %v6071_v44, %v6074_v14  ;;  %v463_v0 = vadd.s32 1, %v6075_v45  ;;  %v536_v29 = vshrl.u32 %v5503_v43, %v524_v51  ;;  %v538_v3 = vshll.u32 %v5503_v43, %v523_v17  ;;  %4592 = vmatprep.mubr.f32.mxu1 %v5836_v56 }
  0xdd   : > { %v528_v15 = vor.u32 %v527_v1, %v526_v49  ;;  %v531_v16 = vor.u32 %v530_v61, %v529_v4  ;;  %v534_v7 = vor.u32 %v533_v57, %v532_v19  ;;  %v539_v21 = vshrl.u32 %v5504_v62, %v524_v51 }
  0xde   : > { %v464_v59 = vsel %vm462_vm7, %v463_v0, %v6075_v45  ;;  %v537_v39 = vor.u32 %v536_v29, %v535_v47  ;;  %vm541_vm8 = vcmp.lt.s32.totalorder %v522_v12, 1  ;;  %vm544_vm9 = vcmp.lt.s32.totalorder %v522_v12, 4 }
  0xdf   : > { %v465_v41 = vadd.s32 %v464_v59, %v460_v20  ;;  %v540_v2 = vor.u32 %v539_v21, %v538_v3  ;;  %vm543_vm10 = vcmp.lt.s32.totalorder %v522_v12, 3  ;;  %v546_v11 = vsel %vm544_vm9, %v534_v7, 2102212464  ;;  %4593 = vmatmul.mubr.f32.gmra.mrb[12].mxu1 %v5841_v58 }
  0xe0   : > { %v525_v9 = vshrl.u32 %v5499_v38, %v524_v51  ;;  %v549_v43 = vsel %vm541_vm8, %v528_v15, %v531_v16  ;;  %v550_v8 = vsel %vm544_vm9, %v537_v39, 920167782  ;;  %v553_v17 = vsel %vm541_vm8, %v531_v16, %v534_v7  ;;  %4595 = vmatprep.mubr.f32.mxu1 %v5892_v53 }
  0xe1   : > { %v466_v62 = vadd.s32 536870912, %v465_v41  ;;  %vm542_vm11 = vcmp.lt.s32.totalorder %v522_v12, 2  ;;  %v551_v33 = vsel %vm543_vm10, %v534_v7, %v550_v8  ;;  %v554_v40 = vsel %vm544_vm9, %v540_v2, 1326507024 }
  0xe2   : > { %v545_v42 = vsel %vm541_vm8, %v525_v9, %v528_v15  ;;  %v547_v50 = vsel %vm543_vm10, %v531_v16, %v546_v11  ;;  %v552_v45 = vsel %vm542_vm11, %v549_v43, %v551_v33  ;;  %v555_v20 = vsel %vm543_vm10, %v537_v39, %v554_v40 }
  0xe3   : > { %v6096_v49 = vshrl.u32 %v466_v62, 30  ;;  %v556_v38 = vsel %vm542_vm11, %v553_v17, %v555_v20  ;;  %v6099_v51 = vmul.u32.u64.low %v6079_v28, %v552_v45  ;;  %v6100_v4 = vmul.u32.u64.high %v6079_v28, %v552_v45, %v6099_v51  ;;  %4596 = vmatmul.mubr.f32.gmra.mrb[14].mxu1 %v5894_v52 }
  0xe4   : > { %v6103_v19 = vmul.u32.u64.low %v6079_v28, %v556_v38  ;;  %v6104_v1 = vmul.u32.u64.high %v6079_v28, %v556_v38, %v6103_v19  ;;  %v548_v12 = vsel %vm542_vm11, %v545_v42, %v547_v50  ;;  %4606 = vmatprep.mubr.f32.mxu1 %v5724_v22  ;;  %v461_v2 = vadd.s32 %v6074_v14, %v6071_v44 }
  0xe5   : > { %v468_v61 = vshll.u32 %v6096_v49, 30  ;;  %v567_v47 = vadd.s32 1, %v6100_v4  ;;  %v564_v0 = vmul.u32 %v6079_v28, %v548_v12  ;;  %vm511_vm2 = vcmp.lt.s32.totalorder %v6035_v63, 0 }
  0xe6   : > { %vm566_vm12 = vc.u32 %v6104_v1, %v6099_v51  ;;  %v565_v50 = vadd.s32 %v6099_v51, %v6104_v1  ;;  %vm6146_vm3 = vcmp.le.f32.partialorder %v509_v5, 0.7853982  ;;  %vm497_vm7 = vweird.f32 %v6025_v48 }
  0xe7   : > { %v469_v57 = vsub.s32 %v465_v41, %v468_v61  ;;  %v568_v3 = vsel %vm566_vm12, %v567_v47, %v6100_v4  ;;  %4607 = vmatmul.mubr.f32.vlgmr.msra.gmra.mrb[0].mxu1 %v5726_v23  ;;  %vm601_vm11 = vweird.f32 %v6035_v63  ;;  %vm2680_vm12 = vcmask 523264  }
  0xe8   : > { %v569_v15 = vadd.s32 %v568_v3, %v564_v0  ;;  %4609 = vmatprep.mubr.f32.mxu1 %v5728_v24 }
  0xe9   : > { %v471_v29 = vsub.s32 0, %v469_v57 }
  0xea   : > { %v570_v7 = vadd.s32 536870912, %v569_v15 }
  0xeb   : > { %v4040_v16 = vmin.u32 %v471_v29, %v469_v57  ;;  %4610 = vmatmul.mubr.f32.gmra.mrb[2].mxu1 %v5747_v34 }
  0xec   : > { %v6117_v59 = vshrl.u32 %v570_v7, 30  ;;  %4612 = vmatprep.mubr.f32.mxu1 %v5750_v35 }
  0xed   : > { %v473_v21 = vclz %v4040_v16 }
  0xee   : > { %v572_v39 = vshll.u32 %v6117_v59, 30 }
  0xef   : > { %v4041_v28 = vadd.s32 4294967294, %v473_v21  ;;  %4613 = vmatmul.mubr.f32.gmra.mrb[4].mxu1 %v5752_v36 }
  0xf0   : > { %v573_v22 = vsub.s32 %v569_v15, %v572_v39  ;;  %4615 = vmatprep.mubr.f32.mxu1 %v5754_v37  ;;  %v491_v37 = vsub.s32 4, %v6096_v49 }
  0xf1   : > { %vm4042_vm13 = vcmp.lt.s32.totalorder %v4041_v28, 0 }
  0xf2   : > { %v476_v41 = vsel %vm4042_vm13, 0, %v4041_v28  ;;  %v575_v9 = vsub.s32 0, %v573_v22 }
  0xf3   : > { %v477_v11 = vsub.s32 32, %v476_v41  ;;  %v481_v23 = vsub.s32 4294967266, %v476_v41  ;;  %v478_v24 = vshll.u32 %v469_v57, %v476_v41  ;;  %4616 = vmatmul.mubr.f32.gmra.mrb[6].mxu1 %v5772_v46 }
  0xf4   : > { %v4044_v17 = vmin.u32 %v575_v9, %v573_v22  ;;  %4618 = vmatprep.mubr.f32.mxu1 %v5813_v25 }
  0xf5   : > { %v479_v43 = vshrl.u32 %v461_v2, %v477_v11  ;;  %v482_v8 = vadd.s32 127, %v481_v23 }
  0xf6   : > { %v577_v33 = vclz %v4044_v17 }
  0xf7   : > { %v480_v34 = vor.u32 %v479_v43, %v478_v24  ;;  %v483_v62 = vshll.u32 %v482_v8, 23  ;;  %4619 = vmatmul.mubr.f32.gmra.mrb[8].mxu1 %v5815_v26 }
  0xf8   : > { %v4045_v44 = vadd.s32 4294967294, %v577_v33  ;;  %4621 = vmatprep.mubr.f32.mxu1 %v5817_v27  ;;  %v492_v27 = vsel %vm407_vm15, %v491_v37, %v6096_v49 }
  0xf9   : > { %v484_v35 = vor.u32 4788187, %v483_v62  ;;  %v487_v40 = vcvt.s32.f32 %v480_v34  ;;  %v494_v12 = vsel %vm406_vm1, 0, %v492_v27 }
  0xfa   : > { %vm4046_vm14 = vcmp.lt.s32.totalorder %v4045_v44, 0  ;;  %v498_v55 = vadd.s32 3, %v494_v12  ;;  %v2670_v12 = vld [vmem:[%s6863_s7 + $0x28] sm:$0xff] }
  0xfb   : > { %v485_v14 = vand.u32 2147483647, %v484_v35  ;;  %v580_v42 = vsel %vm4046_vm14, 0, %v4045_v44  ;;  %4622 = vmatmul.mubr.f32.gmra.mrb[10].mxu1 %v5823_v30 }
  0xfc   : > { %v581_v45 = vsub.s32 32, %v580_v42  ;;  %v585_v20 = vsub.s32 4294967266, %v580_v42  ;;  %v582_v25 = vshll.u32 %v573_v22, %v580_v42  ;;  %4624 = vmatprep.mubr.f32.mxu1 %v5836_v56  ;;  %v595_v56 = vsub.s32 4, %v6117_v59 }
  0xfd   : > { %v488_v36 = vmul.f32 %v487_v40, %v485_v14  ;;  %v499_v0 = vand.u32 3, %v498_v55 }
  0xfe   : > { %v583_v38 = vshrl.u32 %v565_v50, %v581_v45  ;;  %v586_v4 = vadd.s32 127, %v585_v20 }
  0xff   : > { %v489_v46 = vxor.u32 2147483648, %v488_v36  ;;  %4625 = vmatmul.mubr.f32.gmra.mrb[12].mxu1 %v5841_v58  ;;  %vm504_vm4 = vcmp.eq.s32.totalorder %v499_v0, 2  ;;  %vm501_vm5 = vcmp.eq.s32.totalorder %v499_v0, 0  ;;  %vm500_vm6 = vcmp.lt.s32.totalorder %v499_v0, 2  ;;  %v2672_v0 = vld [vmem:[%s6863_s7 + $0x38] sm:$0xff] }
 0x100   : > { %v584_v19 = vor.u32 %v583_v38, %v582_v25  ;;  %v587_v1 = vshll.u32 %v586_v4, 23  ;;  %4627 = vmatprep.mubr.f32.mxu1 %v5892_v53  ;;  %v596_v53 = vsel %vm511_vm2, %v595_v56, %v6117_v59  ;;  %v2667_v38 = vld [vmem:[%s6863_s7 + $0x10] sm:$0xff]  ;;  %v2668_v4 = vld [vmem:[%s6863_s7 + $0x18] sm:$0xff] }
 0x101   : > { %v490_v26 = vsel %vm407_vm15, %v489_v46, %v488_v36  ;;  %v598_v7 = vsel %vm6146_vm3, 0, %v596_v53  ;;  %v2739_v27 = vand.u32 4294901760, %v2668_v4 }
 0x102   : > { %v493_v51 = vsel %vm406_vm1, %v6025_v48, %v490_v26  ;;  %v588_v61 = vor.u32 4788187, %v587_v1  ;;  %v591_v57 = vcvt.s32.f32 %v584_v19  ;;  %v602_v39 = vadd.s32 3, %v598_v7 }
 0x103   : > { %5325 = vcosq.f32 %v493_v51  ;;  %4628 = vmatmul.mubr.f32.gmra.mrb[14].mxu1 %v5894_v52  ;;  %v2736_v26 = vand.u32 4294901760, %v2667_v38 }
 0x104   : > { %5327 = vsinq.f32 %v493_v51  ;;  %v589_v30 = vand.u32 2147483647, %v588_v61  ;;  %v603_v11 = vand.u32 3, %v602_v39  ;;  %v2669_v61 = vld [vmem:[%s6863_s7 + $0x20] sm:$0xff] }
 0x105   : > { %v6215_v19 = vpack.c.bf16 %v2739_v27, %v2736_v26 }
 0x106   : > { %v592_v47 = vmul.f32 %v591_v57, %v589_v30  ;;  %vm608_vm8 = vcmp.eq.s32.totalorder %v603_v11, 2  ;;  %vm605_vm9 = vcmp.eq.s32.totalorder %v603_v11, 0  ;;  %vm604_vm10 = vcmp.lt.s32.totalorder %v603_v11, 2 }
 0x107   : > { %v2742_v30 = vand.u32 4294901760, %v2669_v61  ;;  %v2745_v57 = vand.u32 4294901760, %v2670_v12  ;;  %v6273_v11 = vsub.f32 %v2668_v4, %v2739_v27 }
 0x108   : > { %v593_v49 = vxor.u32 2147483648, %v592_v47 }
 0x10a   : > { %v594_v58 = vsel %vm511_vm2, %v593_v49, %v592_v47  ;;  %v6231_v47 = vpack.c.bf16 %v2745_v57, %v2742_v30  ;;  %v2671_v49 = vld [vmem:[%s6863_s7 + $0x30] sm:$0xff] }
 0x10b   : > { %v597_v15 = vsel %vm6146_vm3, %v6035_v63, %v594_v58  ;;  %v2748_v29 = vand.u32 4294901760, %v2671_v49  ;;  %v2751_v58 = vand.u32 4294901760, %v2672_v0 }
 0x10c   : > { %5329 = vcosq.f32 %v597_v15 }
 0x10d   : > { %v5326_v3 = vpop.eup %5325  ;;  %5331 = vsinq.f32 %v597_v15 }
 0x10e   : > { %v5328_v16 = vpop.eup %5327  ;;  %v505_v52 = vxor.u32 2147483648, %v5326_v3 }
 0x10f   : > { %v502_v21 = vxor.u32 2147483648, %v5328_v16 }
 0x110   : > { %v506_v5 = vsel %vm504_vm4, %v505_v52, %v5328_v16 }
 0x111   : > { %v503_v28 = vsel %vm501_vm5, %v5326_v3, %v502_v21  ;;  %v6247_v3 = vpack.c.bf16 %v2751_v58, %v2748_v29 }
 0x112   : > { %v507_v59 = vsel %vm500_vm6, %v503_v28, %v506_v5 }
 0x113   : > { %v508_v41 = vsel %vm497_vm7, nan, %v507_v59 }
 0x114   : > { %v626_v22 = vsel %vm624_vm0, %v508_v41, 0 }
 0x115   : > { %v700_v2 = vand.u32 4294901760, %v626_v22 }
 0x116   : > { %v5330_v9 = vpop.eup %5329 }
 0x117   : > { %v701_v23 = vsub.f32 %v626_v22, %v700_v2  ;;  %v5332_v24 = vpop.eup %5331  ;;  %v609_v8 = vxor.u32 2147483648, %v5330_v9 }
 0x118   : > { %v606_v17 = vxor.u32 2147483648, %v5332_v24 }
 0x119   : > { %v702_v43 = vand.u32 4294901760, %v701_v23  ;;  %v610_v62 = vsel %vm608_vm8, %v609_v8, %v5332_v24  ;;  %v6880_v24 = vand.u32 4294901760, %v6273_v11 }
 0x11a   : > { %v607_v33 = vsel %vm605_vm9, %v5330_v9, %v606_v17 }
 0x11b   : > { %v703_v34 = vsub.f32 %v701_v23, %v702_v43  ;;  %v611_v48 = vsel %vm604_vm10, %v607_v33, %v610_v62  ;;  %v2987_v8 = vsub.f32 %v6273_v11, %v6880_v24  ;;  %v6288_v33 = vsub.f32 %v2669_v61, %v2742_v30 }
 0x11c   : > { %v612_v44 = vsel %vm601_vm11, nan, %v611_v48 }
 0x11d   : > { %v704_v35 = vand.u32 4294901760, %v703_v34  ;;  %v629_v14 = vsel %vm624_vm0, %v612_v44, 0  ;;  %v2988_v34 = vand.u32 4294901760, %v2987_v8  ;;  %v6879_v48 = vand.u32 4294901760, %v6288_v33 }
 0x11e   : > { %v710_v40 = vand.u32 4294901760, %v629_v14 }
 0x11f   : > { %4380 = vmatprep.mubr.f32.mxu0 %v704_v35  ;;  %v6290_v35 = vsub.f32 %v2670_v12, %v2745_v57 }
 0x120   : > { %v711_v36 = vsub.f32 %v629_v14, %v710_v40  ;;  %v2994_v14 = vsub.f32 %v6288_v33, %v6879_v48 }
 0x121   : > { %v6878_v44 = vand.u32 4294901760, %v6290_v35  ;;  %v6326_v30 = vpack.c.bf16 %v6290_v35, %v6288_v33 }
 0x122   : > { %v712_v42 = vand.u32 4294901760, %v711_v36 }
 0x124   : > { %v713_v37 = vsub.f32 %v711_v36, %v712_v42 }
 0x126   : > { %v714_v50 = vand.u32 4294901760, %v713_v37  ;;  %v6300_v37 = vsub.f32 %v2671_v49, %v2748_v29  ;;  %v5505_v49 = vmov 1966171168   ;;  %v2363_v29 = vlaneseq }
 0x128   : > { %4381 = vmatmul.mubr.f32.vlgmr.msra.gmra.mrb[0].mxu0 %v714_v50  ;;  %v6302_v50 = vsub.f32 %v2672_v0, %v2751_v58  ;;  %v2361_v0 = vunpack.c.l.s4 %v5505_v49 }
 0x129   : > { %4881 = vmatpush3.bf16.msra.mxu0 %v5982_v13  ;;  %4391 = vmatprep.mubr.f32.mxu0 %v700_v2 }
 0x12a   : > { %4883 = vmatprep.subr.bf16.mxu0 %v5993_v60  ;;  %v6330_v57 = vpack.c.bf16 %v6302_v50, %v6300_v37  ;;  %v2362_v58 = vunpack.c.0.s8 %v2361_v0 }
 0x12d   : > { %4885 = vmatpush3.bf16.msra.mxu0 %v5993_v60 }
 0x12e   : > { %4887 = vmatprep.subr.bf16.mxu0 %v5995_v31 }
 0x130   : > { %4392 = vmatmul.mubr.f32.vlgmr.msra.gmra.mrb[0].mxu0 %v710_v40 }
 0x131   : > { %4889 = vmatpush3.bf16.msra.mxu0 %v5995_v31  ;;  %4402 = vmatprep.mubr.f32.mxu0 %v701_v23 }
 0x132   : > { %4891 = vmatprep.subr.bf16.mxu0 %v6003_v32 }
 0x135   : > { %4893 = vmatpush3.bf16.msra.mxu0 %v6003_v32 }
 0x136   : > { %4895 = vmatprep.subr.bf16.mxu0 %v5964_v6 }
 0x138   : > { %4403 = vmatmul.mubr.f32.vlgmr.msra.gmra.mrb[0].mxu0 %v711_v36  ;;  %v2995_v36 = vand.u32 4294901760, %v2994_v14 }
 0x139   : > { %4897 = vmatpush3.bf16.msra.mxu0 %v5964_v6  ;;  %4413 = vmatprep.mubr.f32.mxu0 %v702_v43 }
 0x13a   : > { %4899 = vmatprep.subr.bf16.mxu0 %v5966_v18 }
 0x13d   : > { %4901 = vmatpush3.bf16.msra.mxu0 %v5966_v18 }
 0x13e   : > { %4903 = vmatprep.subr.bf16.mxu0 %v6023_v54 }
 0x140   : > { %4414 = vmatmul.mubr.f32.vlgmr.msra.gmra.mrb[0].mxu0 %v712_v42 }
 0x141   : > { %4905 = vmatpush3.bf16.msra.mxu0 %v6023_v54  ;;  %4424 = vmatprep.mubr.f32.mxu0 %v700_v2 }
 0x142   : > { %4907 = vmatprep.subr.bf16.mxu0 %v6033_v10 }
 0x145   : > { %4909 = vmatpush3.bf16.msra.mxu0 %v6033_v10 }
 0x146   : > { %4911 = vmatprep.subr.bf16.mxu0 %v5964_v6 }
 0x148   : > { %4425 = vmatmul.mubr.f32.vlgmr.msra.gmra.mrb[0].mxu0 %v710_v40 }
 0x149   : > { %4913 = vmatpush3.bf16.msra.mxu0 %v5964_v6  ;;  %4435 = vmatprep.mubr.f32.mxu0 %v700_v2  ;;  %v2665_v6 = vld [vmem:[%s6863_s7] sm:$0xff]  ;;  %v6271_v2 = vsub.f32 %v2667_v38, %v2736_v26 }
 0x14a   : > { %4915 = vmatprep.subr.bf16.mxu0 %v5966_v18  ;;  %v2730_v63 = vand.u32 4294901760, %v2665_v6 }
 0x14b   : > { %v6882_v9 = vand.u32 4294901760, %v6271_v2  ;;  %v6322_v12 = vpack.c.bf16 %v6273_v11, %v6271_v2 }
 0x14c   : > { %v6259_v7 = vsub.f32 %v2665_v6, %v2730_v63 }
 0x14d   : > { %4917 = vmatpush3.bf16.msra.mxu0 %v5966_v18  ;;  %v2666_v18 = vld [vmem:[%s6863_s7 + $0x8] sm:$0xff]  ;;  %v2980_v43 = vsub.f32 %v6271_v2, %v6882_v9 }
 0x14e   : > { %v2733_v45 = vand.u32 4294901760, %v2666_v18  ;;  %v2965_v5 = vand.u32 4294901760, %v6259_v7 }
 0x14f   : > { %v2981_v17 = vand.u32 4294901760, %v2980_v43 }
 0x150   : > { %4436 = vmatmul.mubr.f32.vlgmr.msra.gmra.mrb[0].mxu0 %v710_v40  ;;  %v6199_v46 = vpack.c.bf16 %v2733_v45, %v2730_v63  ;;  %v6261_v21 = vsub.f32 %v2666_v18, %v2733_v45  ;;  %v2966_v39 = vsub.f32 %v6259_v7, %v2965_v5  ;;  %v3001_v40 = vsub.f32 %v6290_v35, %v6878_v44 }
 0x151   : > { %v6286_v62 = vpack.c.bf16 %v2988_v34, %v2981_v17  ;;  %v6877_v18 = vand.u32 4294901760, %v6300_v37  ;;  %v6876_v63 = vand.u32 4294901760, %v6302_v50 }
 0x152   : > { %5062 = vmatprep.subr.bf16.mxu1 %v6199_v46  ;;  %4967 = vmatprep.subr.bf16.mxu0 %v6199_v46  ;;  %v6886_v28 = vand.u32 4294901760, %v6261_v21  ;;  %v2967_v41 = vand.u32 4294901760, %v2966_v39  ;;  %v3002_v42 = vand.u32 4294901760, %v3001_v40  ;;  %v6318_v61 = vpack.c.bf16 %v6261_v21, %v6259_v7 }
 0x153   : > { %5066 = vmatpush3.bf16.msra.mxu1 %v6199_v46  ;;  %4969 = vmatpush3.bf16.msra.mxu0 %v6199_v46  ;;  %v3008_v45 = vsub.f32 %v6300_v37, %v6877_v18  ;;  %v3015_v38 = vsub.f32 %v6302_v50, %v6876_v63  ;;  %v2364_v39 = vshrl.u32 %v2363_v29, 7 }
 0x154   : > { %5063 = vmatprep.subr.bf16.mxu1 %v6215_v19  ;;  %4971 = vmatprep.subr.bf16.mxu0 %v6215_v19  ;;  %v2973_v59 = vsub.f32 %v6261_v21, %v6886_v28  ;;  %v6304_v6 = vpack.c.bf16 %v3002_v42, %v2995_v36 }
 0x155   : > { %v3009_v4 = vand.u32 4294901760, %v3008_v45  ;;  %v3016_v26 = vand.u32 4294901760, %v3015_v38  ;;  %v6335_v40 = vsub.s32 0, %v2364_v39 }
 0x156   : > { %v2974_v22 = vand.u32 4294901760, %v2973_v59  ;;  %v4047_v59 = vld [vmem:[%s6862_s6] ss:$0 sm:$0xff] }
 0x157   : > { %5067 = vmatpush3.bf16.msra.mxu1 %v6215_v19  ;;  %4973 = vmatpush3.bf16.msra.mxu0 %v6215_v19  ;;  %v6314_v27 = vpack.c.bf16 %v3016_v26, %v3009_v4 }
 0x158   : > { %5064 = vmatprep.subr.bf16.mxu1 %v6231_v47  ;;  %4975 = vmatprep.subr.bf16.mxu0 %v6231_v47  ;;  %v6275_v23 = vpack.c.bf16 %v2974_v22, %v2967_v41  ;;  %v2365_v41 = vsub.s32 %v2362_v58, %v2364_v39 }
 0x15b   : > { %5068 = vmatpush3.bf16.msra.mxu1 %v6231_v47  ;;  %4977 = vmatpush3.bf16.msra.mxu0 %v6231_v47 }
 0x15c   : > { %5065 = vmatprep.subr.bf16.mxu1 %v6247_v3  ;;  %4979 = vmatprep.subr.bf16.mxu0 %v6247_v3 }
 0x15f   : > { %5069 = vmatpush3.bf16.msra.mxu1 %v6247_v3  ;;  %4981 = vmatpush3.bf16.msra.mxu0 %v6247_v3 }
 0x160   : > { %4983 = vmatprep.subr.bf16.mxu0 %v6275_v23 }
 0x1ba   : > { %v6179_v13 = vpop.f32.mrb[0].mxu1 }
 0x1bb   : > { %v6181_v60 = vpop.f32.mrb[1].mxu1 }
 0x1be   : > { %v6183_v31 = vpop.f32.mrb[2].mxu1 }
 0x1bf   : > { %v6185_v32 = vpop.f32.mrb[3].mxu1 }
 0x1c2   : > { %v6187_v54 = vpop.f32.mrb[4].mxu1 }
 0x1c3   : > { %v6189_v10 = vpop.f32.mrb[5].mxu1 }
 0x1c6   : > { %v6197_v20 = vpop.f32.mrb[6].mxu1 }
 0x1c7   : > { %v6201_v25 = vpop.f32.mrb[7].mxu1 }
 0x1ca   : > { %v6213_v51 = vpop.f32.mrb[8].mxu1 }
 0x1cb   : > { %v6217_v1 = vpop.f32.mrb[9].mxu1 }
 0x1ce   : > { %v6229_v55 = vpop.f32.mrb[10].mxu1 }
 0x1cf   : > { %v6233_v56 = vpop.f32.mrb[11].mxu1 }
 0x1d2   : > { %v6245_v53 = vpop.f32.mrb[12].mxu1 }
 0x1d3   : > { %v6249_v15 = vpop.f32.mrb[13].mxu1 }
 0x1d6   : > { %v6255_v16 = vpop.f32.mrb[14].mxu1 }
 0x1d7   : > { %v6257_v52 = vpop.f32.mrb[15].mxu1 }
 0x223   : > { %v4437_v22 = vpop.f32.mrb[0].mxu0 }
 0x224   : > { %v5070_v43 = vadd.f32 %v4437_v22, %v4047_v59  ;;  %v1149_v8 = vpop.f32.mrb[1].mxu0 }
 0x225   : > { %v5071_v17 = vadd.f32 %v4047_v59, %v1149_v8 }
 0x226   : > { %v2408_v34 = vcombine.high %v5070_v43, %v5070_v43  ;;  %v2415_v14 = vrot.slane %v5070_v43, %v2365_v41 }
 0x227   : > { %v2359_v36 = vcombine.high %v5071_v17, %v5071_v17  ;;  %v2366_v42 = vrot.slane %v5071_v17, %v2365_v41 }
 0x228   : > { %v2422_v45 = vrot.slane %v2408_v34, %v2365_v41  ;;  %v2423_v38 = vcombine.high %v2415_v14, %v2415_v14  ;;  %v2431_v4 = vrot.slane %v2415_v14, %v2365_v41 }
 0x229   : > { %v2373_v26 = vrot.slane %v2359_v36, %v2365_v41  ;;  %v2374_v49 = vcombine.high %v2366_v42, %v2366_v42  ;;  %v2382_v0 = vrot.slane %v2366_v42, %v2365_v41 }
 0x22a   : > { %v2424_v29 = vcombine.high %v2422_v45, %v2422_v45  ;;  %v2438_v63 = vrot.slane %v2422_v45, %v2365_v41  ;;  %v2445_v18 = vrot.slane %v2423_v38, %v2365_v41  ;;  %v2453_v58 = vcombine.high %v2431_v4, %v2431_v4 }
 0x22b   : > { %v2492_v22 = vrot.slane %v2431_v4, %v6335_v40  ;;  %v2375_v44 = vcombine.high %v2373_v26, %v2373_v26  ;;  %v2389_v59 = vrot.slane %v2373_v26, %v2365_v41  ;;  %v2396_v8 = vrot.slane %v2374_v49, %v2365_v41 }
 0x22c   : > { %v2452_v43 = vrot.slane %v2424_v29, %v2365_v41  ;;  %v2454_v39 = vcombine.high %v2438_v63, %v2438_v63  ;;  %v2455_v48 = vcombine.high %v2445_v18, %v2445_v18  ;;  %v2496_v17 = vrot.slane %v2445_v18, %v6335_v40 }
 0x22d   : > { %v2500_v34 = vrot.slane %v2453_v58, %v6335_v40  ;;  %v2508_v14 = vrot.slane %v2438_v63, %v6335_v40  ;;  %v6342_v36 = vadd.f32 %v2492_v22, %v6217_v1  ;;  %v2403_v42 = vrot.slane %v2375_v44, %v2365_v41 }
 0x22e   : > { %v2456_v45 = vcombine.high %v2452_v43, %v2452_v43  ;;  %v2504_v38 = vrot.slane %v2455_v48, %v6335_v40  ;;  %v2512_v4 = vrot.slane %v2452_v43, %v6335_v40  ;;  %v2516_v26 = vrot.slane %v2454_v39, %v6335_v40 }
 0x22f   : > { %v6348_v49 = vadd.f32 %v6213_v51, %v2496_v17  ;;  %v6351_v18 = vadd.f32 %v2500_v34, %v6233_v56  ;;  %v6354_v29 = vadd.f32 %v2508_v14, %v6249_v15  ;;  %v4056_v1 = vmul.f32 -1.442695, %v6342_v36 }
 0x230   : > { %v2520_v44 = vrot.slane %v2456_v45, %v6335_v40  ;;  %v2404_v63 = vcombine.high %v2382_v0, %v2382_v0  ;;  %v2405_v41 = vcombine.high %v2389_v59, %v2389_v59  ;;  %v2406_v48 = vcombine.high %v2396_v8, %v2396_v8 }
 0x231   : > { %5333 = vpow2.f32 %v4056_v1  ;;  %v4057_v58 = vmul.f32 -1.442695, %v6348_v49  ;;  %v4058_v22 = vmul.f32 -1.442695, %v6351_v18  ;;  %v4060_v51 = vmul.f32 -1.442695, %v6354_v29 }
 0x232   : > { %v2407_v43 = vcombine.high %v2403_v42, %v2403_v42  ;;  %v2460_v56 = vrot.slane %v2382_v0, %v6335_v40  ;;  %v2464_v15 = vrot.slane %v2396_v8, %v6335_v40  ;;  %v2468_v39 = vrot.slane %v2404_v63, %v6335_v40 }
 0x233   : > { %5335 = vpow2.f32 %v4057_v58  ;;  %v2472_v17 = vrot.slane %v2406_v48, %v6335_v40  ;;  %v2476_v34 = vrot.slane %v2389_v59, %v6335_v40  ;;  %v2480_v14 = vrot.slane %v2403_v42, %v6335_v40 }
 0x234   : > { %5337 = vpow2.f32 %v4058_v22  ;;  %v2484_v45 = vrot.slane %v2405_v41, %v6335_v40  ;;  %v2488_v1 = vrot.slane %v2407_v43, %v6335_v40  ;;  %v6370_v24 = vadd.f32 %v2460_v56, %v6181_v60 }
 0x235   : > { %5339 = vpow2.f32 %v4060_v51  ;;  %v6373_v0 = vadd.f32 %v6179_v13, %v2464_v15  ;;  %v6376_v8 = vadd.f32 %v2468_v39, %v6185_v32  ;;  %v6379_v63 = vadd.f32 %v6183_v31, %v2472_v17 }
 0x236   : > { %v6382_v59 = vadd.f32 %v2476_v34, %v6189_v10  ;;  %v4048_v42 = vmul.f32 -1.442695, %v6370_v24  ;;  %v6386_v40 = vadd.f32 %v6187_v54, %v2480_v14  ;;  %v6389_v60 = vadd.f32 %v2484_v45, %v6201_v25 }
 0x237   : > { %v4049_v13 = vmul.f32 -1.442695, %v6373_v0  ;;  %v4050_v41 = vmul.f32 -1.442695, %v6376_v8  ;;  %v4051_v32 = vmul.f32 -1.442695, %v6379_v63  ;;  %v6395_v31 = vadd.f32 %v6197_v20, %v2488_v1 }
 0x238   : > { %5341 = vpow2.f32 %v4048_v42  ;;  %v4052_v10 = vmul.f32 -1.442695, %v6382_v59  ;;  %v4053_v48 = vmul.f32 -1.442695, %v6386_v40  ;;  %v6400_v54 = vadd.f32 %v6229_v55, %v2504_v38 }
 0x239   : > { %5343 = vpow2.f32 %v4049_v13  ;;  %v6403_v25 = vadd.f32 %v6245_v53, %v2512_v4  ;;  %v6406_v58 = vadd.f32 %v2516_v26, %v6257_v52  ;;  %v6409_v22 = vadd.f32 %v6255_v16, %v2520_v44 }
 0x23a   : > { %5345 = vpow2.f32 %v4050_v41  ;;  %v4054_v51 = vmul.f32 -1.442695, %v6389_v60  ;;  %v4055_v52 = vmul.f32 -1.442695, %v6395_v31  ;;  %v4059_v16 = vmul.f32 -1.442695, %v6400_v54 }
 0x23b   : > { %v5334_v20 = vpop.eup %5333  ;;  %5347 = vpow2.f32 %v4051_v32  ;;  %v4061_v32 = vmul.f32 -1.442695, %v6403_v25 }
 0x23c   : > { %v2609_v43 = vadd.f32 1.0, %v5334_v20  ;;  %5349 = vpow2.f32 %v4052_v10 }
 0x23d   : > { %v5336_v56 = vpop.eup %5335  ;;  %5351 = vpow2.f32 %v4053_v48 }
 0x23e   : > { %v5338_v55 = vpop.eup %5337  ;;  %v2610_v38 = vadd.f32 1.0, %v5336_v56  ;;  %5353 = vrcp.f32 %v2609_v43 }
 0x23f   : > { %v5340_v53 = vpop.eup %5339  ;;  %v2611_v4 = vadd.f32 1.0, %v5338_v55  ;;  %5355 = vpow2.f32 %v4054_v51 }
 0x240   : > { %v2613_v26 = vadd.f32 1.0, %v5340_v53  ;;  %5357 = vrcp.f32 %v2610_v38 }
 0x241   : > { %5359 = vrcp.f32 %v2611_v4  ;;  %v4062_v4 = vmul.f32 -1.442695, %v6406_v58 }
 0x242   : > { %v5342_v44 = vpop.eup %5341  ;;  %5361 = vrcp.f32 %v2613_v26 }
 0x243   : > { %v5344_v15 = vpop.eup %5343  ;;  %v2601_v39 = vadd.f32 1.0, %v5342_v44  ;;  %5363 = vpow2.f32 %v4055_v52 }
 0x244   : > { %v5346_v17 = vpop.eup %5345  ;;  %v2602_v34 = vadd.f32 1.0, %v5344_v15  ;;  %5365 = vpow2.f32 %v4059_v16 }
 0x245   : > { %v5348_v14 = vpop.eup %5347  ;;  %v2603_v45 = vadd.f32 1.0, %v5346_v17  ;;  %5367 = vrcp.f32 %v2601_v39 }
 0x246   : > { %v5350_v1 = vpop.eup %5349  ;;  %v2604_v42 = vadd.f32 1.0, %v5348_v14  ;;  %5369 = vrcp.f32 %v2602_v34 }
 0x247   : > { %v5352_v13 = vpop.eup %5351  ;;  %v2605_v41 = vadd.f32 1.0, %v5350_v1  ;;  %5371 = vrcp.f32 %v2603_v45  ;;  %v4063_v45 = vmul.f32 -1.442695, %v6409_v22 }
 0x248   : > { %v5354_v10 = vpop.eup %5353  ;;  %5373 = vrcp.f32 %v2604_v42  ;;  %v2606_v48 = vadd.f32 1.0, %v5352_v13 }
 0x249   : > { %v5356_v20 = vpop.eup %5355  ;;  %5375 = vrcp.f32 %v2605_v41  ;;  %v2657_v51 = vmul.f32 %v5354_v10, %v6342_v36 }
 0x24a   : > { %v5358_v43 = vpop.eup %5357  ;;  %5377 = vrcp.f32 %v2606_v48  ;;  %v2607_v56 = vadd.f32 1.0, %v5356_v20 }
 0x24b   : > { %v5360_v55 = vpop.eup %5359  ;;  %v2706_v38 = vsel %vm2680_vm12, %v2657_v51, 0  ;;  %v2658_v53 = vmul.f32 %v5358_v43, %v6348_v49  ;;  %5379 = vpow2.f32 %v4061_v32 }
 0x24c   : > { %v5362_v52 = vpop.eup %5361  ;;  %5381 = vrcp.f32 %v2607_v56  ;;  %v2659_v26 = vmul.f32 %v5360_v55, %v6351_v18  ;;  %v6421_v39 = vand.u32 4294901760, %v2706_v38 }
 0x24d   : > { %v5364_v16 = vpop.eup %5363  ;;  %v2661_v44 = vmul.f32 %v5362_v52, %v6354_v29  ;;  %v6424_v17 = vsel %vm2680_vm12, %v2658_v53, 0  ;;  %5383 = vpow2.f32 %v4062_v4 }
 0x24e   : > { %v5366_v15 = vpop.eup %5365  ;;  %v2608_v36 = vadd.f32 1.0, %v5364_v16  ;;  %v6427_v49 = vsel %vm2680_vm12, %v2659_v26, 0  ;;  %v6433_v13 = vand.u32 4294901760, %v6424_v17 }
 0x24f   : > { %v5368_v34 = vpop.eup %5367  ;;  %v2612_v14 = vadd.f32 1.0, %v5366_v15  ;;  %v6436_v41 = vsel %vm2680_vm12, %v2661_v44, 0  ;;  %v6441_v20 = vand.u32 4294901760, %v6427_v49 }
 0x250   : > { %v5370_v1 = vpop.eup %5369  ;;  %v2649_v18 = vmul.f32 %v5368_v34, %v6370_v24  ;;  %5385 = vrcp.f32 %v2608_v36  ;;  %v6444_v24 = vsub.f32 %v2706_v38, %v6421_v39  ;;  %v6455_v52 = vand.u32 4294901760, %v6436_v41 }
 0x251   : > { %v5372_v29 = vpop.eup %5371  ;;  %v2650_v42 = vmul.f32 %v5370_v1, %v6373_v0  ;;  %5387 = vrcp.f32 %v2612_v14 }
 0x252   : > { %v5374_v32 = vpop.eup %5373  ;;  %v2651_v10 = vmul.f32 %v5372_v29, %v6376_v8  ;;  %v2682_v48 = vsel %vm2680_vm12, %v2649_v18, 0  ;;  %5389 = vpow2.f32 %v4063_v45 }
 0x253   : > { %v5376_v51 = vpop.eup %5375  ;;  %v2652_v0 = vmul.f32 %v5374_v32, %v6379_v63  ;;  %v6447_v43 = vand.u32 4294901760, %v2682_v48  ;;  %v2685_v56 = vsel %vm2680_vm12, %v2650_v42, 0 }
 0x254   : > { %v5378_v55 = vpop.eup %5377  ;;  %v2688_v53 = vsel %vm2680_vm12, %v2651_v10, 0  ;;  %v2653_v8 = vmul.f32 %v5376_v51, %v6382_v59  ;;  %v6452_v4 = vand.u32 4294901760, %v2685_v56 }
 0x255   : > { %v5380_v38 = vpop.eup %5379  ;;  %v6457_v26 = vand.u32 4294901760, %v2688_v53  ;;  %v2691_v63 = vsel %vm2680_vm12, %v2652_v0, 0  ;;  %v6461_v16 = vsub.f32 %v2682_v48, %v6447_v43  ;;  %v2654_v44 = vmul.f32 %v5378_v55, %v6386_v40 }
 0x256   : > { %v5382_v15 = vpop.eup %5381  ;;  %v6464_v36 = vand.u32 4294901760, %v2691_v63  ;;  %v2694_v59 = vsel %vm2680_vm12, %v2653_v8, 0  ;;  %v6468_v34 = vsub.f32 %v2685_v56, %v6452_v4  ;;  %v2614_v14 = vadd.f32 1.0, %v5380_v38 }
 0x257   : > { %4849 = vmatprep.mubr.f32.mxu1 %v6457_v26  ;;  %v6471_v45 = vand.u32 4294901760, %v2694_v59  ;;  %v6884_v1 = vand.u32 4294901760, %v6461_v16  ;;  %v2697_v18 = vsel %vm2680_vm12, %v2654_v44, 0  ;;  %v2655_v29 = vmul.f32 %v5382_v15, %v6389_v60  ;;  %v5384_v48 = vpop.eup %5383 }
 0x258   : > { %4850 = vmatmul.mubr.f32.vlgmr.msra.gmra.mrb[16].mxu1 %v6464_v36  ;;  %v6477_v40 = vand.u32 4294901760, %v2697_v18  ;;  %v6881_v42 = vand.u32 4294901760, %v6468_v34  ;;  %v6481_v32 = vsub.f32 %v2688_v53, %v6457_v26  ;;  %v6484_v10 = vsub.f32 %v2691_v63, %v6464_v36 }
 0x259   : > { %4852 = vmatprep.mubr.f32.mxu1 %v6471_v45  ;;  %v2805_v51 = vsub.f32 %v6461_v16, %v6884_v1  ;;  %v2700_v60 = vsel %vm2680_vm12, %v2655_v29, 0  ;;  %v6492_v0 = vsub.f32 %v2694_v59, %v6471_v45  ;;  %5391 = vrcp.f32 %v2614_v14 }
 0x25a   : > { %v5386_v56 = vpop.eup %5385  ;;  %v6494_v55 = vand.u32 4294901760, %v2700_v60  ;;  %v2815_v53 = vsub.f32 %v6468_v34, %v6881_v42  ;;  %v6883_v8 = vand.u32 4294901760, %v6481_v32  ;;  %v6885_v38 = vand.u32 4294901760, %v6484_v10 }
 0x25b   : > { %v5388_v63 = vpop.eup %5387  ;;  %v2806_v44 = vand.u32 4294901760, %v2805_v51  ;;  %v2656_v15 = vmul.f32 %v5386_v56, %v6395_v31  ;;  %v6887_v29 = vand.u32 4294901760, %v6492_v0  ;;  %v6504_v59 = vsub.f32 %v2697_v18, %v6477_v40 }
 0x25c   : > { %4853 = vmatmul.mubr.f32.gmra.mrb[18].mxu1 %v6477_v40  ;;  %v2816_v14 = vand.u32 4294901760, %v2815_v53  ;;  %v2825_v42 = vsub.f32 %v6481_v32, %v6883_v8  ;;  %v2835_v9 = vsub.f32 %v6484_v10, %v6885_v38  ;;  %v6514_v51 = vsub.f32 %v2700_v60, %v6494_v55  ;;  %v5390_v31 = vpop.eup %5389 }
 0x25d   : > { %4646 = vmatprep.mubr.f32.mxu0 %v2806_v44  ;;  %4855 = vmatprep.mubr.f32.mxu1 %v6494_v55  ;;  %v2703_v18 = vsel %vm2680_vm12, %v2656_v15, 0  ;;  %v2845_v56 = vsub.f32 %v6492_v0, %v6887_v29  ;;  %v2854_v53 = vand.u32 4294901760, %v6504_v59  ;;  %v2660_v8 = vmul.f32 %v5388_v63, %v6400_v54 }
 0x25e   : > { %4647 = vmatmul.mubr.f32.vlgmr.msra.gmra.mrb[2].mxu0 %v2816_v14  ;;  %v2826_v1 = vand.u32 4294901760, %v2825_v42  ;;  %v6523_v38 = vand.u32 4294901760, %v2703_v18  ;;  %v2864_v60 = vand.u32 4294901760, %v6514_v51  ;;  %v6890_v44 = vand.u32 4294901760, %v6444_v24 }
 0x25f   : > { %4985 = vmatpush3.bf16.msra.mxu0 %v6275_v23  ;;  %v2715_v15 = vsel %vm2680_vm12, %v2660_v8, 0  ;;  %v2615_v28 = vadd.f32 1.0, %v5384_v48  ;;  %v6531_v29 = vsub.f32 %v6424_v17, %v6433_v13  ;;  %v6535_v54 = vsub.f32 %v6427_v49, %v6441_v20 }
 0x260   : > { %4649 = vmatprep.mubr.f32.mxu0 %v2826_v1  ;;  %4856 = vmatmul.mubr.f32.gmra.mrb[20].mxu1 %v6523_v38  ;;  %v2836_v42 = vand.u32 4294901760, %v2835_v9  ;;  %v2855_v63 = vsub.f32 %v6504_v59, %v2854_v53  ;;  %v6541_v23 = vand.u32 4294901760, %v2715_v15  ;;  %v6544_v48 = vsub.f32 %v2703_v18, %v6523_v38 }
 0x261   : > { %4858 = vmatprep.mubr.f32.mxu1 %v6421_v39  ;;  %v2846_v17 = vand.u32 4294901760, %v2845_v56  ;;  %4987 = vmatprep.subr.bf16.mxu0 %v6286_v62  ;;  %v2865_v49 = vsub.f32 %v6514_v51, %v2864_v60  ;;  %5393 = vrcp.f32 %v2615_v28  ;;  %v2616_v9 = vadd.f32 1.0, %v5390_v31 }
 0x262   : > { %4650 = vmatmul.mubr.f32.gmra.mrb[4].mxu0 %v2836_v42  ;;  %v2874_v1 = vand.u32 4294901760, %v6544_v48  ;;  %v6888_v14 = vand.u32 4294901760, %v6531_v29  ;;  %v2856_v18 = vand.u32 4294901760, %v2855_v63  ;;  %v6561_v31 = vsub.f32 %v2715_v15, %v6541_v23 }
 0x263   : > { %v5392_v8 = vpop.eup %5391  ;;  %4652 = vmatprep.mubr.f32.mxu0 %v2846_v17  ;;  %4989 = vmatpush3.bf16.msra.mxu0 %v6286_v62  ;;  %5395 = vrcp.f32 %v2616_v9  ;;  %v2866_v62 = vand.u32 4294901760, %v2865_v49  ;;  %v2885_v42 = vsub.f32 %v6444_v24, %v6890_v44  ;;  %v6889_v63 = vand.u32 4294901760, %v6535_v54 }
 0x264   : > { %4859 = vmatmul.mubr.f32.gmra.mrb[22].mxu1 %v6433_v13  ;;  %v2875_v56 = vsub.f32 %v6544_v48, %v2874_v1  ;;  %v2662_v28 = vmul.f32 %v5392_v8, %v6403_v25  ;;  %4991 = vmatprep.subr.bf16.mxu0 %v6304_v6  ;;  %v6570_v17 = vsub.f32 %v6436_v41, %v6455_v52  ;;  %v6891_v8 = vand.u32 4294901760, %v6561_v31 }
 0x265   : > { %4861 = vmatprep.mubr.f32.mxu1 %v6441_v20  ;;  %v2895_v49 = vsub.f32 %v6531_v29, %v6888_v14  ;;  %v2886_v41 = vand.u32 4294901760, %v2885_v42  ;;  %v6910_v7 = vand.u32 4294901760, %v6461_v16 }
 0x266   : > { %4653 = vmatmul.mubr.f32.gmra.mrb[6].mxu0 %v2856_v18  ;;  %v2721_v25 = vsel %vm2680_vm12, %v2662_v28, 0  ;;  %v2876_v15 = vand.u32 4294901760, %v2875_v56  ;;  %v2905_v18 = vsub.f32 %v6535_v54, %v6889_v63  ;;  %v2915_v42 = vsub.f32 %v6561_v31, %v6891_v8 }
 0x267   : > { %4655 = vmatprep.mubr.f32.mxu0 %v2866_v62  ;;  %v6573_v9 = vand.u32 4294901760, %v2721_v25  ;;  %4993 = vmatpush3.bf16.msra.mxu0 %v6304_v6  ;;  %v6892_v6 = vand.u32 4294901760, %v6570_v17  ;;  %v2896_v14 = vand.u32 4294901760, %v2895_v49 }
 0x268   : > { %4862 = vmatmul.mubr.f32.gmra.mrb[24].mxu1 %v6541_v23  ;;  %4995 = vmatprep.subr.bf16.mxu0 %v6314_v27  ;;  %v2906_v44 = vand.u32 4294901760, %v2905_v18 }
 0x269   : > { %4864 = vmatprep.mubr.f32.mxu1 %v6455_v52  ;;  %v6588_v28 = vsub.f32 %v2721_v25, %v6573_v9 }
 0x26a   : > { %4656 = vmatmul.mubr.f32.gmra.mrb[8].mxu0 %v2876_v15  ;;  %v2925_v15 = vsub.f32 %v6570_v17, %v6892_v6 }
 0x26b   : > { %v5394_v56 = vpop.eup %5393  ;;  %4658 = vmatprep.mubr.f32.mxu0 %v2886_v41  ;;  %4997 = vmatpush3.bf16.msra.mxu0 %v6314_v27  ;;  %v2934_v63 = vand.u32 4294901760, %v6588_v28 }
 0x26c   : > { %4865 = vmatmul.mubr.f32.gmra.mrb[26].mxu1 %v6573_v9  ;;  %v2663_v62 = vmul.f32 %v5394_v56, %v6406_v58  ;;  %4999 = vmatprep.subr.bf16.mxu0 %v6318_v61  ;;  %v2916_v56 = vand.u32 4294901760, %v2915_v42  ;;  %v2926_v6 = vand.u32 4294901760, %v2925_v15 }
 0x26d   : > { %v5396_v25 = vpop.eup %5395  ;;  %v2935_v8 = vsub.f32 %v6588_v28, %v2934_v63 }
 0x26e   : > { %v2724_v27 = vsel %vm2680_vm12, %v2663_v62, 0  ;;  %4659 = vmatmul.mubr.f32.gmra.mrb[10].mxu0 %v2896_v14  ;;  %v2664_v58 = vmul.f32 %v5396_v25, %v6409_v22 }
 0x26f   : > { %v6603_v49 = vand.u32 4294901760, %v2724_v27  ;;  %4661 = vmatprep.mubr.f32.mxu0 %v2906_v44  ;;  %v2936_v14 = vand.u32 4294901760, %v2935_v8  ;;  %v6914_v8 = vand.u32 4294901760, %v6481_v32 }
 0x270   : > { %v2727_v41 = vsel %vm2680_vm12, %v2664_v58, 0  ;;  %v6915_v58 = vand.u32 4294901760, %v6288_v33  ;;  %v6921_v33 = vand.u32 4294901760, %v6444_v24 }
 0x271   : > { %4867 = vmatprep.mubr.f32.mxu1 %v6603_v49  ;;  %v6610_v18 = vand.u32 4294901760, %v2727_v41  ;;  %v6613_v62 = vsub.f32 %v2724_v27, %v6603_v49 }
 0x272   : > { %4662 = vmatmul.mubr.f32.gmra.mrb[12].mxu0 %v2916_v56 }
 0x273   : > { %4868 = vmatmul.mubr.f32.gmra.mrb[28].mxu1 %v6610_v18  ;;  %4664 = vmatprep.mubr.f32.mxu0 %v2926_v6  ;;  %v2944_v22 = vand.u32 4294901760, %v6613_v62  ;;  %v6618_v44 = vsub.f32 %v2727_v41, %v6610_v18  ;;  %v6916_v41 = vand.u32 4294901760, %v6290_v35  ;;  %v6922_v35 = vand.u32 4294901760, %v6531_v29 }
 0x275   : > { %v2945_v42 = vsub.f32 %v6613_v62, %v2944_v22  ;;  %v2954_v25 = vand.u32 4294901760, %v6618_v44  ;;  %v5038_v56 = vpack.c.bf16 %v6916_v41, %v6915_v58 }
 0x276   : > { %4665 = vmatmul.mubr.f32.gmra.mrb[14].mxu0 %v2936_v14 }
 0x277   : > { %v2946_v15 = vand.u32 4294901760, %v2945_v42  ;;  %v2955_v27 = vsub.f32 %v6618_v44, %v2954_v25 }
 0x279   : > { %4667 = vmatprep.mubr.f32.mxu0 %v2946_v15  ;;  %v2956_v6 = vand.u32 4294901760, %v2955_v27 }
 0x27b   : > { %4668 = vmatmul.mubr.f32.gmra.mrb[16].mxu0 %v2956_v6 }
 0x27c   : > { %4686 = vmatprep.mubr.f32.mxu0 %v6447_v43 }
 0x27f   : > { %4687 = vmatmul.mubr.f32.vlgmr.msra.gmra.mrb[2].mxu0 %v6452_v4 }
 0x280   : > { %5001 = vmatpush3.bf16.msra.mxu0 %v6318_v61  ;;  %4689 = vmatprep.mubr.f32.mxu0 %v6457_v26  ;;  %v6909_v61 = vand.u32 4294901760, %v6261_v21  ;;  %v6911_v21 = vand.u32 4294901760, %v6271_v2  ;;  %v6918_v2 = vand.u32 4294901760, %v6492_v0 }
 0x281   : > { %5003 = vmatprep.subr.bf16.mxu0 %v6322_v12 }
 0x283   : > { %4690 = vmatmul.mubr.f32.gmra.mrb[4].mxu0 %v6464_v36 }
 0x284   : > { %4692 = vmatprep.mubr.f32.mxu0 %v6471_v45  ;;  %5005 = vmatpush3.bf16.msra.mxu0 %v6322_v12  ;;  %v5030_v12 = vpack.c.bf16 %v6909_v61, %v2965_v5  ;;  %v6912_v5 = vand.u32 4294901760, %v6273_v11  ;;  %v6919_v11 = vand.u32 4294901760, %v6300_v37  ;;  %v6923_v37 = vand.u32 4294901760, %v6535_v54 }
 0x285   : > { %5007 = vmatprep.subr.bf16.mxu0 %v6326_v30 }
 0x287   : > { %4693 = vmatmul.mubr.f32.gmra.mrb[6].mxu0 %v6477_v40 }
 0x288   : > { %4695 = vmatprep.mubr.f32.mxu0 %v6494_v55  ;;  %5009 = vmatpush3.bf16.msra.mxu0 %v6326_v30  ;;  %v5034_v30 = vpack.c.bf16 %v6912_v5, %v6911_v21 }
 0x289   : > { %5011 = vmatprep.subr.bf16.mxu0 %v6330_v57 }
 0x28b   : > { %4696 = vmatmul.mubr.f32.gmra.mrb[8].mxu0 %v6523_v38 }
 0x28c   : > { %4698 = vmatprep.mubr.f32.mxu0 %v6421_v39  ;;  %5013 = vmatpush3.bf16.msra.mxu0 %v6330_v57  ;;  %v6913_v57 = vand.u32 4294901760, %v6468_v34 }
 0x28d   : > { %5015 = vmatprep.subr.bf16.mxu0 %v6199_v46 }
 0x28f   : > { %4699 = vmatmul.mubr.f32.gmra.mrb[10].mxu0 %v6433_v13 }
 0x290   : > { %4701 = vmatprep.mubr.f32.mxu0 %v6441_v20 }
 0x293   : > { %4702 = vmatmul.mubr.f32.gmra.mrb[12].mxu0 %v6541_v23 }
 0x294   : > { %4704 = vmatprep.mubr.f32.mxu0 %v6455_v52 }
 0x297   : > { %4705 = vmatmul.mubr.f32.gmra.mrb[14].mxu0 %v6573_v9 }
 0x298   : > { %4707 = vmatprep.mubr.f32.mxu0 %v6603_v49 }
 0x29b   : > { %4708 = vmatmul.mubr.f32.gmra.mrb[16].mxu0 %v6610_v18 }
 0x29c   : > { %4726 = vmatprep.mubr.f32.mxu0 %v6461_v16  ;;  %v6917_v16 = vand.u32 4294901760, %v6484_v10 }
 0x29f   : > { %4727 = vmatmul.mubr.f32.vlgmr.msra.gmra.mrb[2].mxu0 %v6468_v34  ;;  %v6920_v34 = vand.u32 4294901760, %v6302_v50  ;;  %v6924_v50 = vand.u32 4294901760, %v6561_v31 }
 0x2a0   : > { %5017 = vmatpush3.bf16.msra.mxu0 %v6199_v46  ;;  %4729 = vmatprep.mubr.f32.mxu0 %v6481_v32 }
 0x2a1   : > { %5019 = vmatprep.subr.bf16.mxu0 %v6215_v19  ;;  %v5042_v32 = vpack.c.bf16 %v6920_v34, %v6919_v11 }
 0x2a3   : > { %4730 = vmatmul.mubr.f32.gmra.mrb[4].mxu0 %v6484_v10  ;;  %v6925_v10 = vand.u32 4294901760, %v6570_v17 }
 0x2a4   : > { %4732 = vmatprep.mubr.f32.mxu0 %v6492_v0  ;;  %5021 = vmatpush3.bf16.msra.mxu0 %v6215_v19 }
 0x2a5   : > { %5023 = vmatprep.subr.bf16.mxu0 %v6231_v47 }
 0x2a7   : > { %4733 = vmatmul.mubr.f32.gmra.mrb[6].mxu0 %v6504_v59 }
 0x2a8   : > { %4735 = vmatprep.mubr.f32.mxu0 %v6514_v51  ;;  %5025 = vmatpush3.bf16.msra.mxu0 %v6231_v47 }
 0x2a9   : > { %5027 = vmatprep.subr.bf16.mxu0 %v6247_v3 }
 0x2ab   : > { %4736 = vmatmul.mubr.f32.gmra.mrb[8].mxu0 %v6544_v48 }
 0x2ac   : > { %4738 = vmatprep.mubr.f32.mxu0 %v6444_v24  ;;  %5029 = vmatpush3.bf16.msra.mxu0 %v6247_v3 }
 0x2ad   : > { %5031 = vmatprep.subr.bf16.mxu0 %v5030_v12 }
 0x2af   : > { %4739 = vmatmul.mubr.f32.gmra.mrb[10].mxu0 %v6531_v29 }
 0x2b0   : > { %4741 = vmatprep.mubr.f32.mxu0 %v6535_v54 }
 0x2b3   : > { %4742 = vmatmul.mubr.f32.gmra.mrb[12].mxu0 %v6561_v31 }
 0x2b4   : > { %4744 = vmatprep.mubr.f32.mxu0 %v6570_v17 }
 0x2b7   : > { %4745 = vmatmul.mubr.f32.gmra.mrb[14].mxu0 %v6588_v28 }
 0x2b8   : > { %4747 = vmatprep.mubr.f32.mxu0 %v6613_v62 }
 0x2bb   : > { %4748 = vmatmul.mubr.f32.gmra.mrb[16].mxu0 %v6618_v44 }
 0x2bc   : > { %4766 = vmatprep.mubr.f32.mxu0 %v6910_v7 }
 0x2bf   : > { %4767 = vmatmul.mubr.f32.vlgmr.msra.gmra.mrb[2].mxu0 %v6913_v57 }
 0x2c0   : > { %5033 = vmatpush3.bf16.msra.mxu0 %v5030_v12  ;;  %4769 = vmatprep.mubr.f32.mxu0 %v6914_v8 }
 0x2c1   : > { %5035 = vmatprep.subr.bf16.mxu0 %v5034_v30 }
 0x2c3   : > { %4770 = vmatmul.mubr.f32.gmra.mrb[4].mxu0 %v6917_v16 }
 0x2c4   : > { %4772 = vmatprep.mubr.f32.mxu0 %v6918_v2  ;;  %5037 = vmatpush3.bf16.msra.mxu0 %v5034_v30 }
 0x2c5   : > { %5039 = vmatprep.subr.bf16.mxu0 %v5038_v56 }
 0x2c7   : > { %4773 = vmatmul.mubr.f32.gmra.mrb[6].mxu0 %v2854_v53 }
 0x2c8   : > { %4775 = vmatprep.mubr.f32.mxu0 %v2864_v60  ;;  %5041 = vmatpush3.bf16.msra.mxu0 %v5038_v56 }
 0x2c9   : > { %5043 = vmatprep.subr.bf16.mxu0 %v5042_v32 }
 0x2cb   : > { %4776 = vmatmul.mubr.f32.gmra.mrb[8].mxu0 %v2874_v1 }
 0x2cc   : > { %4778 = vmatprep.mubr.f32.mxu0 %v6921_v33  ;;  %5045 = vmatpush3.bf16.msra.mxu0 %v5042_v32 }
 0x2cd   : > { %5047 = vmatprep.subr.bf16.mxu0 %v6199_v46 }
 0x2cf   : > { %4779 = vmatmul.mubr.f32.gmra.mrb[10].mxu0 %v6922_v35 }
 0x2d0   : > { %4781 = vmatprep.mubr.f32.mxu0 %v6923_v37 }
 0x2d3   : > { %4782 = vmatmul.mubr.f32.gmra.mrb[12].mxu0 %v6924_v50 }
 0x2d4   : > { %4784 = vmatprep.mubr.f32.mxu0 %v6925_v10 }
 0x2d7   : > { %4785 = vmatmul.mubr.f32.gmra.mrb[14].mxu0 %v2934_v63 }
 0x2d8   : > { %4787 = vmatprep.mubr.f32.mxu0 %v2944_v22 }
 0x2db   : > { %4788 = vmatmul.mubr.f32.gmra.mrb[16].mxu0 %v2954_v25 }
 0x2dc   : > { %4806 = vmatprep.mubr.f32.mxu0 %v6447_v43 }
 0x2df   : > { %4807 = vmatmul.mubr.f32.vlgmr.msra.gmra.mrb[2].mxu0 %v6452_v4 }
 0x2e0   : > { %5049 = vmatpush3.bf16.msra.mxu0 %v6199_v46  ;;  %4809 = vmatprep.mubr.f32.mxu0 %v6457_v26 }
 0x2e1   : > { %5051 = vmatprep.subr.bf16.mxu0 %v6215_v19 }
 0x2e3   : > { %4810 = vmatmul.mubr.f32.gmra.mrb[4].mxu0 %v6464_v36 }
 0x2e4   : > { %4812 = vmatprep.mubr.f32.mxu0 %v6471_v45  ;;  %5053 = vmatpush3.bf16.msra.mxu0 %v6215_v19 }
 0x2e5   : > { %5055 = vmatprep.subr.bf16.mxu0 %v6231_v47 }
 0x2e7   : > { %4813 = vmatmul.mubr.f32.gmra.mrb[6].mxu0 %v6477_v40 }
 0x2e8   : > { %4815 = vmatprep.mubr.f32.mxu0 %v6494_v55  ;;  %5057 = vmatpush3.bf16.msra.mxu0 %v6231_v47 }
 0x2e9   : > { %5059 = vmatprep.subr.bf16.mxu0 %v6247_v3 }
 0x2eb   : > { %4816 = vmatmul.mubr.f32.gmra.mrb[8].mxu0 %v6523_v38 }
 0x2ec   : > { %4818 = vmatprep.mubr.f32.mxu0 %v6421_v39  ;;  %5061 = vmatpush3.bf16.msra.mxu0 %v6247_v3 }
 0x2ef   : > { %4819 = vmatmul.mubr.f32.gmra.mrb[10].mxu0 %v6433_v13 }
 0x2f0   : > { %4821 = vmatprep.mubr.f32.mxu0 %v6441_v20 }
 0x2f3   : > { %4822 = vmatmul.mubr.f32.gmra.mrb[12].mxu0 %v6541_v23 }
 0x2f4   : > { %4824 = vmatprep.mubr.f32.mxu0 %v6455_v52 }
 0x2f7   : > { %4825 = vmatmul.mubr.f32.gmra.mrb[14].mxu0 %v6573_v9 }
 0x2f8   : > { %4827 = vmatprep.mubr.f32.mxu0 %v6603_v49 }
 0x2fb   : > { %4828 = vmatmul.mubr.f32.gmra.mrb[16].mxu0 %v6610_v18 }
 0x2fc   : > { %4846 = vmatprep.mubr.f32.mxu0 %v6447_v43  ;;  %v6751_v43 = vld [vmem:[%s6864_s8] ss:$0 sm:$0xff] }
 0x2ff   : > { %4847 = vmatmul.mubr.f32.vlgmr.msra.gmra.mrb[2].mxu0 %v6452_v4 }
 0x32b   : > { %v4851_v46 = vpop.f32.mrb[16].mxu1 }
 0x32c   : > { %v3829_v19 = vpop.f32.mrb[17].mxu1 }
 0x32f   : > { %v4854_v47 = vpop.f32.mrb[18].mxu1 }
 0x330   : > { %v3841_v3 = vpop.f32.mrb[19].mxu1 }
 0x333   : > { %v4857_v39 = vpop.f32.mrb[20].mxu1 }
 0x334   : > { %v3853_v13 = vpop.f32.mrb[21].mxu1 }
 0x337   : > { %v4860_v20 = vpop.f32.mrb[22].mxu1 }
 0x338   : > { %v3865_v24 = vpop.f32.mrb[23].mxu1 }
 0x33b   : > { %v4863_v52 = vpop.f32.mrb[24].mxu1 }
 0x33c   : > { %v3877_v26 = vpop.f32.mrb[25].mxu1 }
 0x33f   : > { %v4866_v36 = vpop.f32.mrb[26].mxu1 }
 0x340   : > { %v3889_v45 = vpop.f32.mrb[27].mxu1 }
 0x346   : > { %v4869_v40 = vpop.f32.mrb[28].mxu1 }
 0x347   : > { %v3901_v0 = vpop.f32.mrb[29].mxu1 }
 0x3b6   : > { %v4811_v4 = vpop.f32.mrb[4].mxu0 }
 0x3b7   : > { %v5074_v55 = vadd.f32 %v4811_v4, %v6751_v43  ;;  %v3660_v38 = vpop.f32.mrb[5].mxu0 }
 0x3b8   : > { %v5076_v29 = vadd.f32 %v6751_v43, %v3660_v38 }
 0x3b9   : > { %v5075_v59 = vadd.f32 %v5074_v55, %v4851_v46 }
 0x3ba   : > { %v5077_v51 = vadd.f32 %v5076_v29, %v3829_v19  ;;  %v4814_v53 = vpop.f32.mrb[6].mxu0 }
 0x3bb   : > { %3914 = vst.msk [vmem:[%s6757_s26 + $0x18] sm:$0xff] %vm624_vm0, %v5075_v59  ;;  %v5078_v60 = vadd.f32 %v4814_v53, %v6751_v43  ;;  %v3672_v54 = vpop.f32.mrb[7].mxu0 }
 0x3bc   : > { %3913 = vst.msk [vmem:[%s6757_s26 + $0x10] sm:$0xff] %vm624_vm0, %v5077_v51  ;;  %v5080_v23 = vadd.f32 %v6751_v43, %v3672_v54 }
 0x3bd   : > { %v5079_v48 = vadd.f32 %v5078_v60, %v4854_v47 }
 0x3be   : > { %v5081_v1 = vadd.f32 %v5080_v23, %v3841_v3  ;;  %v4817_v31 = vpop.f32.mrb[8].mxu0 }
 0x3bf   : > { %3916 = vst.msk [vmem:[%s6757_s26 + $0x28] sm:$0xff] %vm624_vm0, %v5079_v48  ;;  %v5082_v63 = vadd.f32 %v4817_v31, %v6751_v43  ;;  %v3684_v17 = vpop.f32.mrb[9].mxu0 }
 0x3c0   : > { %3915 = vst.msk [vmem:[%s6757_s26 + $0x20] sm:$0xff] %vm624_vm0, %v5081_v1  ;;  %v5084_v9 = vadd.f32 %v6751_v43, %v3684_v17 }
 0x3c1   : > { %v5083_v28 = vadd.f32 %v5082_v63, %v4857_v39 }
 0x3c2   : > { %v5085_v49 = vadd.f32 %v5084_v9, %v3853_v13  ;;  %v4820_v18 = vpop.f32.mrb[10].mxu0 }
 0x3c3   : > { %3918 = vst.msk [vmem:[%s6757_s26 + $0x38] sm:$0xff] %vm624_vm0, %v5083_v28  ;;  %v5086_v62 = vadd.f32 %v4820_v18, %v6751_v43  ;;  %v3696_v22 = vpop.f32.mrb[11].mxu0 }
 0x3c4   : > { %3917 = vst.msk [vmem:[%s6757_s26 + $0x30] sm:$0xff] %vm624_vm0, %v5085_v49  ;;  %v5088_v44 = vadd.f32 %v6751_v43, %v3696_v22 }
 0x3c5   : > { %v5087_v14 = vadd.f32 %v5086_v62, %v4860_v20 }
 0x3c6   : > { %v5089_v42 = vadd.f32 %v5088_v44, %v3865_v24  ;;  %v4823_v25 = vpop.f32.mrb[12].mxu0 }
 0x3c7   : > { %3920 = vst.msk [vmem:[%s6757_s26 + $0x48] sm:$0xff] %vm624_vm0, %v5087_v14  ;;  %v5090_v15 = vadd.f32 %v4823_v25, %v6751_v43  ;;  %v3708_v27 = vpop.f32.mrb[13].mxu0 }
 0x3c8   : > { %3919 = vst.msk [vmem:[%s6757_s26 + $0x40] sm:$0xff] %vm624_vm0, %v5089_v42  ;;  %v5092_v6 = vadd.f32 %v6751_v43, %v3708_v27 }
 0x3c9   : > { %v5091_v61 = vadd.f32 %v5090_v15, %v4863_v52 }
 0x3ca   : > { %v5093_v12 = vadd.f32 %v5092_v6, %v3877_v26  ;;  %v4826_v7 = vpop.f32.mrb[14].mxu0 }
 0x3cb   : > { %3922 = vst.msk [vmem:[%s6757_s26 + $0x58] sm:$0xff] %vm624_vm0, %v5091_v61  ;;  %v5094_v21 = vadd.f32 %v4826_v7, %v6751_v43  ;;  %v3720_v5 = vpop.f32.mrb[15].mxu0 }
 0x3cc   : > { %3921 = vst.msk [vmem:[%s6757_s26 + $0x50] sm:$0xff] %vm624_vm0, %v5093_v12  ;;  %v5096_v30 = vadd.f32 %v6751_v43, %v3720_v5 }
 0x3cd   : > { %v5095_v57 = vadd.f32 %v5094_v21, %v4866_v36 }
 0x3ce   : > { %v5097_v8 = vadd.f32 %v5096_v30, %v3889_v45  ;;  %v4829_v58 = vpop.f32.mrb[16].mxu0 }
 0x3cf   : > { %3924 = vst.msk [vmem:[%s6757_s26 + $0x68] sm:$0xff] %vm624_vm0, %v5095_v57  ;;  %v5098_v41 = vadd.f32 %v4829_v58, %v6751_v43  ;;  %v3732_v56 = vpop.f32.mrb[17].mxu0 }
 0x3d0   : > { %3923 = vst.msk [vmem:[%s6757_s26 + $0x60] sm:$0xff] %vm624_vm0, %v5097_v8  ;;  %v5100_v16 = vadd.f32 %v6751_v43, %v3732_v56 }
 0x3d1   : > { %v5099_v2 = vadd.f32 %v5098_v41, %v4869_v40 }
 0x3d2   : > { %v5101_v11 = vadd.f32 %v5100_v16, %v3901_v0  ;;  %v4848_v34 = vpop.f32.mrb[2].mxu0 }
 0x3d3   : > { %3926 = vst.msk [vmem:[%s6757_s26 + $0x78] sm:$0xff] %vm624_vm0, %v5099_v2  ;;  %v5072_v32 = vadd.f32 %v4848_v34, %v6751_v43  ;;  %v3817_v33 = vpop.f32.mrb[3].mxu0 }
 0x3d4   : > { %3925 = vst.msk [vmem:[%s6757_s26 + $0x70] sm:$0xff] %vm624_vm0, %v5101_v11  ;;  %v5073_v35 = vadd.f32 %v6751_v43, %v3817_v33 }
 0x3d5   : > { %3912 = vst.msk [vmem:[%s6757_s26 + $0x8] sm:$0xff] %vm624_vm0, %v5072_v32 }
 0x3d6   : > { %3911 = vst.msk [vmem:[%s6757_s26] sm:$0xff] %vm624_vm0, %v5073_v35 }
 0x3d7   : > { %5440 = shalt.err (!%p5437_p4)
}
 0x3d8   : > { %s5441_s27 = scalar_lea.hbm %s6803_s28, 2048  ;;  %s5445_s20 = scalar_lea.hbm %s6865_s9, 4096 }
 0x3d9   : > { %p5442_p5 = scmp.ne.s32.totalorder %s6803_s28, %s5441_s27  ;;  %p5446_p1 = scmp.lt.u32.totalorder %s6803_s28, %s6865_s9 }
 0x3da   : > { %p5447_p3 = scmp.lt.u32.totalorder %s5445_s20, %s5441_s27  ;;  %p5449_p6 = scmp.lt.u32.totalorder %s5441_s27, %s6803_s28 }
 0x3db   : > { %p5443_p7 = pnand %p5442_p5, %p6926_p12 }
 0x3dc   : > { %p5448_p11 = por %p5447_p3, %p5446_p1 }
 0x3dd   : > { %p5444_p9 = pneg %p5443_p7 }
 0x3de   : > { %p5450_p13 = por %p5449_p6, %p5448_p11 }
 0x3e0   : > { %p5451_p8 = pnand %p5450_p13, %p5444_p9 }
 0x3e2   : > { %5454 = shalt.err (!%p5451_p8)
}
 0x3e3   : > { %s5507_s14 = smov 128   ;;  %s5508_s17 = smov 8  }
 0x3e4   : > { %5268 = dma.vmem_to_hbm [thread:$0]  (%p6926_p12), %s6805_s25, 2048, %s6803_s28, %s3928_s13, %s5507_s14, %s5507_s14, %s5508_s17  }
 0x3e5 PF: > { %s3956_s19 = sand.u32 1, %s5481_s30   ;;  %p6927_p10 = scmp.ne.s32.totalorder %s6896_s22, 0 }
 0x3e6   : > { %p6928_p0 = scmp.ge.s32.totalorder %s5493_s12, 2  ;;  %s3957_s27 = scalar_lea.sflag [#allocation4], %s3956_s19 }
 0x3e8   : > { %p5275_p2 = pnand %p6928_p0, %p6927_p10 }
 0x3ea   : > { %5476 = dma.done.wait (!%p5275_p2), %s3957_s27, 2048  }
 0x3eb   : > { %5478 = vsyncadd (!%p5275_p2), %s3957_s27, 4294965248  ;;  %p22_p4 = scmp.ge.s32.totalorder %s5584_s15, 4   ;;  %s6929_s30 = smov %s5485_s10 }
 0x3ec   : > { %s6930_s10 = smov %s5489_s11  ;;  %s6931_s11 = smov %s5596_s18 }
 0x3ed   : > { %s6932_s12 = smov %s5584_s15  ;;  %24 = sbr.rel (!%p22_p4) target bundleno = 5 (0x5), region = 104 }
 0x3f4   :  { %3962 = vsyncpa [#allocation3], 1 }
 0x3f5   :  { %3964 = vsyncpa [#allocation3 + $0x1], 1 }
 0x3f6   :  { %3965 = vsyncpa [#allocation4], 1 }
 0x3f7   :  { %3967 = vsyncpa [#allocation4 + $0x1], 1 }

</bundles_post_ra>
